<compile_context>
chip_gen: v7x
topology: tpu7x:2x2x1
jax: 0.10.0
libtpu: 0.0.40
codegen_flags: <defaults>
</compile_context>

<pallas_src>
import jax
import jax.numpy as jnp
from jax import lax
from jax.experimental import pallas as pl
from jax.experimental.pallas import tpu as pltpu

# Dot-input dtype.  float32 keeps exact parity with the PyTorch/lax reference;
# set to jnp.bfloat16 on v5e/v6e for ~2x MXU throughput (accumulation stays f32,
# loosen the comparison tolerance accordingly).
MATMUL_DTYPE = jnp.float32


def _prod(shape):
    n = 1
    for d in shape:
        n *= int(d)
    return n


# ------------------------------ fused kernel --------------------------------

def _make_fused_conv_kernel(stride, Ho, Wo, Cin, Cout, shortcut_mode):
    """relu(x*scale+shift) -> 3x3 conv (pad 1, stride) -> +bias [-> +shortcut].

    shortcut_mode: "none" | "identity" | "proj" (fused 1x1-conv projection).
    One grid step processes one batch element; all spatial work stays in VMEM.
    """
    s = stride
    e = 2 // s            # zero-padding cells carried by each stride-phase

    def body(xph_ref, scale_ref, shift_ref, w_ref, bias_ref, extra, o_ref, pad_ref):
        # 1) zero the padded phase scratch (conv zero-padding must stay exactly 0
        #    even though relu(bn(0)) != 0 in general).
        pad_ref[...] = jnp.zeros_like(pad_ref)

        # 2) fused folded-BN + ReLU on the input tile, written into phase interiors.
        scale = scale_ref[...].reshape(1, 1, Cin)
        shift = shift_ref[...].reshape(1, 1, Cin)
        for a in range(s):
            for b in range(s):
                pr = (a + s - 1) % s          # input stride-phase feeding pad-phase (a, b)
                pc = (b + s - 1) % s
                sub = xph_ref[pr * s + pc, :, :, :]                 # (Ho, Wo, Cin)
                act = jnp.maximum(sub * scale + shift, 0.0)
                r0 = 1 if a == 0 else 0
                c0 = 1 if b == 0 else 0
                pad_ref[a * s + b, r0:r0 + Ho, c0:c0 + Wo, :] = act

        # 3) 3x3 conv: 9 accumulating MXU dots over contiguous phase windows.
        acc = jnp.zeros((Ho * Wo, Cout), jnp.float32)
        for kh in range(3):
            for kw in range(3):
                p = (kh % s) * s + (kw % s)
                oh, ow = kh // s, kw // s
                win = pad_ref[p, oh:oh + Ho, ow:ow + Wo, :]         # (Ho, Wo, Cin)
                acc = acc + jnp.dot(
                    win.reshape(Ho * Wo, Cin).astype(MATMUL_DTYPE),
                    w_ref[kh * 3 + kw, :, :].astype(MATMUL_DTYPE),
                    preferred_element_type=jnp.float32)
        acc = acc + bias_ref[...]                                   # (1, Cout) broadcast

        # 4) fused residual shortcut.
        if shortcut_mode == "identity":
            (res_ref,) = extra
            acc = acc + res_ref[0, :, :, :].reshape(Ho * Wo, Cout)
        elif shortcut_mode == "proj":
            xs_ref, ws_ref, bs_ref = extra
            csc = xs_ref.shape[-1]
            xs = xs_ref[0, :, :, :].reshape(Ho * Wo, csc)
            acc = acc + jnp.dot(xs.astype(MATMUL_DTYPE),
                                ws_ref[...].astype(MATMUL_DTYPE),
                                preferred_element_type=jnp.float32)
            acc = acc + bs_ref[...]

        o_ref[...] = acc.reshape(1, Ho, Wo, Cout)

    if shortcut_mode == "none":
        def kernel(xph, sc, sh, w, bias, o, pad):
            body(xph, sc, sh, w, bias, (), o, pad)
    elif shortcut_mode == "identity":
        def kernel(xph, sc, sh, w, bias, res, o, pad):
            body(xph, sc, sh, w, bias, (res,), o, pad)
    elif shortcut_mode == "proj":
        def kernel(xph, sc, sh, w, bias, xs, ws, bs, o, pad):
            body(xph, sc, sh, w, bias, (xs, ws, bs), o, pad)
    else:
        raise ValueError(shortcut_mode)
    return kernel


# ------------------------------- wrapper -------------------------------------

def fused_bn_relu_conv3x3(x, scale, shift, w, bias, *, stride=1,
                          shortcut_mode="none", shortcut_x=None,
                          shortcut_w=None, shortcut_b=None):
    """NHWC: relu(x*scale+shift) -> 3x3 conv (pad 1, stride) + bias [+ shortcut]."""
    N, H, W_, Cin = x.shape
    Cout = w.shape[-1]
    s = stride
    assert H % s == 0 and W_ % s == 0, "spatial dims must be divisible by stride"
    Ho, Wo = H // s, W_ // s
    e = 2 // s
    nph = s * s

    # Stride-phase split (free reshape for s=1, one cheap pass for s=2): every 3x3
    # tap becomes a contiguous VMEM window in the kernel -- no HBM im2col tensor.
    xph = (x.reshape(N, Ho, s, Wo, s, Cin)
             .transpose(0, 2, 4, 1, 3, 5)
             .reshape(N * nph, Ho, Wo, Cin))
    w9 = w.reshape(9, Cin, Cout)

    args = [xph, scale.reshape(1, Cin), shift.reshape(1, Cin), w9,
            bias.reshape(1, Cout)]
    block_shapes = [(nph, Ho, Wo, Cin), (1, Cin), (1, Cin), (9, Cin, Cout), (1, Cout)]
    in_specs = [
        pl.BlockSpec((nph, Ho, Wo, Cin), lambda n: (n, 0, 0, 0)),
        pl.BlockSpec((1, Cin), lambda n: (0, 0)),
        pl.BlockSpec((1, Cin), lambda n: (0, 0)),
        pl.BlockSpec((9, Cin, Cout), lambda n: (0, 0, 0)),
        pl.BlockSpec((1, Cout), lambda n: (0, 0)),
    ]
    if shortcut_mode == "identity":
        args.append(shortcut_x)
        block_shapes.append((1, Ho, Wo, Cout))
        in_specs.append(pl.BlockSpec((1, Ho, Wo, Cout), lambda n: (n, 0, 0, 0)))
    elif shortcut_mode == "proj":
        Csc = shortcut_x.shape[-1]
        args += [shortcut_x, shortcut_w, shortcut_b.reshape(1, Cout)]
        block_shapes += [(1, Ho, Wo, Csc), (Csc, Cout), (1, Cout)]
        in_specs += [
            pl.BlockSpec((1, Ho, Wo, Csc), lambda n: (n, 0, 0, 0)),
            pl.BlockSpec((Csc, Cout), lambda n: (0, 0)),
            pl.BlockSpec((1, Cout), lambda n: (0, 0)),
        ]

    scratch_shape = (nph, Ho + e, Wo + e, Cin)
    block_shapes.append((1, Ho, Wo, Cout))                      # output block

    # VMEM budget: double-buffered blocks + scratch + slack, clamped to a safe range.
    est = 2 * sum(4 * _prod(bs_) for bs_ in block_shapes) + 4 * _prod(scratch_shape)
    vmem_limit = int(min(max(est + (2 << 20), 8 << 20), 64 << 20))

    kernel = _make_fused_conv_kernel(s, Ho, Wo, Cin, Cout, shortcut_mode)
    return pl.pallas_call(
        kernel,
        out_shape=jax.ShapeDtypeStruct((N, Ho, Wo, Cout), jnp.float32),
        grid=(N,),
        in_specs=in_specs,
        out_specs=pl.BlockSpec((1, Ho, Wo, Cout), lambda n: (n, 0, 0, 0)),
        scratch_shapes=[pltpu.VMEM(scratch_shape, jnp.float32)],
        compiler_params=pltpu.CompilerParams(
            dimension_semantics=("parallel",),
            vmem_limit_bytes=vmem_limit),
    )(*args)


def _bn_fold(gamma, beta, mean, var, eps=1e-5):
    scale = gamma / jnp.sqrt(var + eps)
    shift = beta - mean * scale
    return scale, shift


def wide_basic_forward(x_nchw, params, in_planes, planes, stride):
    x = jnp.transpose(x_nchw, (0, 2, 3, 1)).astype(jnp.float32)   # NHWC

    scale1, shift1 = _bn_fold(params["bn1_gamma"], params["bn1_beta"],
                              params["bn1_mean"], params["bn1_var"])
    scale2, shift2 = _bn_fold(params["bn2_gamma"], params["bn2_beta"],
                              params["bn2_mean"], params["bn2_var"])

    # kernel 1: bn1 + relu + conv1(3x3, stride 1) + b1, all fused.
    out1 = fused_bn_relu_conv3x3(x, scale1, shift1, params["w1"], params["b1"],
                                 stride=1, shortcut_mode="none")

    # dropout: eval-mode identity.  TODO(synk): train-mode dropout omitted.

    # kernel 2: bn2 + relu + conv2(3x3, stride s) + b2 + shortcut, all fused.
    if stride != 1 or in_planes != planes:
        xs = x[:, ::stride, ::stride, :]       # 1x1-conv projection input (tiny gather)
        out = fused_bn_relu_conv3x3(out1, scale2, shift2, params["w2"], params["b2"],
                                    stride=stride, shortcut_mode="proj",
                                    shortcut_x=xs, shortcut_w=params["ws"],
                                    shortcut_b=params["bs"])
    else:
        out = fused_bn_relu_conv3x3(out1, scale2, shift2, params["w2"], params["b2"],
                                    stride=stride, shortcut_mode="identity",
                                    shortcut_x=x)
    return jnp.transpose(out, (0, 3, 1, 2))    # back to NCHW


# --------------------------- reference (pure JAX) ---------------------------

def ref_forward(x_nchw, params, in_planes, planes, stride):
    x = jnp.transpose(x_nchw, (0, 2, 3, 1)).astype(jnp.float32)
    dn = ("NHWC", "HWIO", "NHWC")

    def bnrelu(v, g, b, m, var):
        return jnp.maximum((v - m) / jnp.sqrt(var + 1e-5) * g + b, 0.0)

    h1 = bnrelu(x, params["bn1_gamma"], params["bn1_beta"],
                params["bn1_mean"], params["bn1_var"])
    out = lax.conv_general_dilated(h1, params["w1"], (1, 1),
                                   [(1, 1), (1, 1)], dimension_numbers=dn) + params["b1"]
    h2 = bnrelu(out, params["bn2_gamma"], params["bn2_beta"],
                params["bn2_mean"], params["bn2_var"])
    out2 = lax.conv_general_dilated(h2, params["w2"], (stride, stride),
                                    [(1, 1), (1, 1)], dimension_numbers=dn) + params["b2"]
    if stride != 1 or in_planes != planes:
        ws = params["ws"].reshape(1, 1, in_planes, planes)
        sc = lax.conv_general_dilated(x, ws, (stride, stride),
                                      [(0, 0), (0, 0)], dimension_numbers=dn) + params["bs"]
    else:
        sc = x
    return jnp.transpose(out2 + sc, (0, 3, 1, 2))


# ------------------------------ param init ----------------------------------

def init_params(key, in_planes, planes, stride):
    ks = jax.random.split(key, 16)
    p = {
        "bn1_gamma": jax.random.uniform(ks[0], (in_planes,), jnp.float32, 0.5, 1.5),
        "bn1_beta":  0.1 * jax.random.normal(ks[1], (in_planes,), jnp.float32),
        "bn1_mean":  0.1 * jax.random.normal(ks[2], (in_planes,), jnp.float32),
        "bn1_var":   jax.random.uniform(ks[3], (in_planes,), jnp.float32, 0.5, 1.5),
        "w1": 0.1 * jax.random.normal(ks[4], (3, 3, in_planes, planes), jnp.float32),
        "b1": 0.1 * jax.random.normal(ks[5], (planes,), jnp.float32),
        "bn2_gamma": jax.random.uniform(ks[6], (planes,), jnp.float32, 0.5, 1.5),
        "bn2_beta":  0.1 * jax.random.normal(ks[7], (planes,), jnp.float32),
        "bn2_mean":  0.1 * jax.random.normal(ks[8], (planes,), jnp.float32),
        "bn2_var":   jax.random.uniform(ks[9], (planes,), jnp.float32, 0.5, 1.5),
        "w2": 0.1 * jax.random.normal(ks[10], (3, 3, planes, planes), jnp.float32),
        "b2": 0.1 * jax.random.normal(ks[11], (planes,), jnp.float32),
    }
    if stride != 1 or in_planes != planes:
        p["ws"] = 0.1 * jax.random.normal(ks[12], (in_planes, planes), jnp.float32)
        p["bs"] = 0.1 * jax.random.normal(ks[13], (planes,), jnp.float32)
    return p


# --------------------------------- main --------------------------------------

if __name__ == "__main__":
    key = jax.random.PRNGKey(0)
    kx, kp1, kp2 = jax.random.split(key, 3)
    x = jax.random.normal(kx, (2, 4, 16, 16), jnp.float32)  # NCHW, like PyTorch

    # Case 1: downsampling block (stride=2, channel change -> fused 1x1-conv shortcut)
    params_a = init_params(kp1, in_planes=4, planes=8, stride=2)
    out_a = wide_basic_forward(x, params_a, 4, 8, 2)
    ref_a = ref_forward(x, params_a, 4, 8, 2)

    # Case 2: identity-shortcut block (stride=1, same channels)
    params_b = init_params(kp2, in_planes=4, planes=4, stride=1)
    out_b = wide_basic_forward(x, params_b, 4, 4, 1)
    ref_b = ref_forward(x, params_b, 4, 4, 1)

    jax.block_until_ready((out_a, out_b))

    assert out_a.shape == (2, 8, 8, 8), out_a.shape
    assert out_b.shape == (2, 4, 16, 16), out_b.shape
    assert jnp.allclose(out_a, ref_a, rtol=1e-4, atol=1e-4), \
        float(jnp.max(jnp.abs(out_a - ref_a)))
    assert jnp.allclose(out_b, ref_b, rtol=1e-4, atol=1e-4), \
        float(jnp.max(jnp.abs(out_b - ref_b)))

    print("KERNEL_OK")
</pallas_src>

<mosaic_0001>
module attributes {stable_mosaic.version = 11 : i64} {
  func.func @kernel(%arg0: i32, %arg1: memref<1x16x16x4xf32, #tpu.memory_space<vmem>>, %arg2: memref<1x4xf32, #tpu.memory_space<vmem>>, %arg3: memref<1x4xf32, #tpu.memory_space<vmem>>, %arg4: memref<9x4x8xf32, #tpu.memory_space<vmem>>, %arg5: memref<1x8xf32, #tpu.memory_space<vmem>>, %arg6: memref<1x16x16x8xf32, #tpu.memory_space<vmem>>, %arg7: memref<1x18x18x4xf32, #tpu.memory_space<vmem>>) attributes {dimension_semantics = [#tpu.dimension_semantics<parallel>], iteration_bounds = array<i64: 2>, scalar_prefetch = 0 : i64, scratch_operands = 1 : i64, tpu.core_type = #tpu.core_type<tc>, window_params = [{transform_indices = @transform_0, window_bounds = array<i64: 1, 16, 16, 4>}, {pipeline_mode = #tpu.pipeline_mode<synchronous>, transform_indices = @transform_1, window_bounds = array<i64: 1, 4>}, {pipeline_mode = #tpu.pipeline_mode<synchronous>, transform_indices = @transform_2, window_bounds = array<i64: 1, 4>}, {pipeline_mode = #tpu.pipeline_mode<synchronous>, transform_indices = @transform_3, window_bounds = array<i64: 9, 4, 8>}, {pipeline_mode = #tpu.pipeline_mode<synchronous>, transform_indices = @transform_4, window_bounds = array<i64: 1, 8>}, {transform_indices = @transform_5, window_bounds = array<i64: 1, 16, 16, 8>}]} {
    %cst = arith.constant 0.000000e+00 : f32
    %0 = vector.broadcast %cst : f32 to vector<1x18x18x4xf32>
    %c0 = arith.constant 0 : index
    %c0_0 = arith.constant 0 : index
    %c0_1 = arith.constant 0 : index
    %c0_2 = arith.constant 0 : index
    %1 = vector.load %arg7[%c0, %c0_0, %c0_1, %c0_2] : memref<1x18x18x4xf32, #tpu.memory_space<vmem>>, vector<1x18x18x4xf32>
    tpu.vector_store %arg7[%c0, %c0_0, %c0_1, %c0_2], %0 {strides = array<i32>} : memref<1x18x18x4xf32, #tpu.memory_space<vmem>>, vector<1x18x18x4xf32>,
    %c0_3 = arith.constant 0 : index
    %c0_4 = arith.constant 0 : index
    %2 = vector.load %arg2[%c0_3, %c0_4] : memref<1x4xf32, #tpu.memory_space<vmem>>, vector<1x4xf32>
    %3 = vector.shape_cast %2 : vector<1x4xf32> to vector<1x1x4xf32>
    %c0_5 = arith.constant 0 : index
    %c0_6 = arith.constant 0 : index
    %4 = vector.load %arg3[%c0_5, %c0_6] : memref<1x4xf32, #tpu.memory_space<vmem>>, vector<1x4xf32>
    %5 = vector.shape_cast %4 : vector<1x4xf32> to vector<1x1x4xf32>
    %c0_7 = arith.constant 0 : index
    %c0_8 = arith.constant 0 : index
    %c0_9 = arith.constant 0 : index
    %c0_10 = arith.constant 0 : index
    %6 = vector.load %arg1[%c0_7, %c0_8, %c0_9, %c0_10] : memref<1x16x16x4xf32, #tpu.memory_space<vmem>>, vector<1x16x16x4xf32>
    %7 = vector.shape_cast %6 : vector<1x16x16x4xf32> to vector<16x16x4xf32>
    %8 = vector.broadcast %3 : vector<1x1x4xf32> to vector<16x16x4xf32>
    %9 = arith.mulf %7, %8 : vector<16x16x4xf32>
    %10 = vector.broadcast %5 : vector<1x1x4xf32> to vector<16x16x4xf32>
    %11 = arith.addf %9, %10 : vector<16x16x4xf32>
    %cst_11 = arith.constant 0.000000e+00 : f32
    %12 = vector.broadcast %cst_11 : f32 to vector<16x16x4xf32>
    %13 = arith.maximumf %11, %12 : vector<16x16x4xf32>
    %c0_12 = arith.constant 0 : index
    %c1 = arith.constant 1 : index
    %c1_13 = arith.constant 1 : index
    %c0_14 = arith.constant 0 : index
    %14 = vector.load %arg7[%c0_12, %c1, %c1_13, %c0_14] : memref<1x18x18x4xf32, #tpu.memory_space<vmem>>, vector<1x16x16x4xf32>
    %15 = vector.shape_cast %14 : vector<1x16x16x4xf32> to vector<16x16x4xf32>
    %16 = vector.shape_cast %13 : vector<16x16x4xf32> to vector<1x16x16x4xf32>
    tpu.vector_store %arg7[%c0_12, %c1, %c1_13, %c0_14], %16 {strides = array<i32>} : memref<1x18x18x4xf32, #tpu.memory_space<vmem>>, vector<1x16x16x4xf32>,
    %cst_15 = arith.constant 0.000000e+00 : f32
    %17 = vector.broadcast %cst_15 : f32 to vector<256x8xf32>
    %c0_16 = arith.constant 0 : index
    %c0_17 = arith.constant 0 : index
    %c0_18 = arith.constant 0 : index
    %c0_19 = arith.constant 0 : index
    %18 = vector.load %arg7[%c0_16, %c0_17, %c0_18, %c0_19] : memref<1x18x18x4xf32, #tpu.memory_space<vmem>>, vector<1x16x16x4xf32>
    %19 = vector.shape_cast %18 : vector<1x16x16x4xf32> to vector<16x16x4xf32>
    %20 = vector.shape_cast %19 : vector<16x16x4xf32> to vector<256x4xf32>
    %c0_20 = arith.constant 0 : index
    %c0_21 = arith.constant 0 : index
    %c0_22 = arith.constant 0 : index
    %21 = vector.load %arg4[%c0_20, %c0_21, %c0_22] : memref<9x4x8xf32, #tpu.memory_space<vmem>>, vector<1x4x8xf32>
    %22 = vector.shape_cast %21 : vector<1x4x8xf32> to vector<4x8xf32>
    %cst_23 = arith.constant dense<0.000000e+00> : vector<256x8xf32>
    %23 = tpu.matmul %20, %22, %cst_23 {dimension_numbers = #tpu.dot_dimension_numbers<[1], [0], [0], [1], [0, 0, 1, 1], [], []>} : vector<256x4xf32>, vector<4x8xf32>, vector<256x8xf32> -> vector<256x8xf32>
    %24 = arith.addf %17, %23 : vector<256x8xf32>
    %c0_24 = arith.constant 0 : index
    %c0_25 = arith.constant 0 : index
    %c1_26 = arith.constant 1 : index
    %c0_27 = arith.constant 0 : index
    %25 = vector.load %arg7[%c0_24, %c0_25, %c1_26, %c0_27] : memref<1x18x18x4xf32, #tpu.memory_space<vmem>>, vector<1x16x16x4xf32>
    %26 = vector.shape_cast %25 : vector<1x16x16x4xf32> to vector<16x16x4xf32>
    %27 = vector.shape_cast %26 : vector<16x16x4xf32> to vector<256x4xf32>
    %c1_28 = arith.constant 1 : index
    %c0_29 = arith.constant 0 : index
    %c0_30 = arith.constant 0 : index
    %28 = vector.load %arg4[%c1_28, %c0_29, %c0_30] : memref<9x4x8xf32, #tpu.memory_space<vmem>>, vector<1x4x8xf32>
    %29 = vector.shape_cast %28 : vector<1x4x8xf32> to vector<4x8xf32>
    %cst_31 = arith.constant dense<0.000000e+00> : vector<256x8xf32>
    %30 = tpu.matmul %27, %29, %cst_31 {dimension_numbers = #tpu.dot_dimension_numbers<[1], [0], [0], [1], [0, 0, 1, 1], [], []>} : vector<256x4xf32>, vector<4x8xf32>, vector<256x8xf32> -> vector<256x8xf32>
    %31 = arith.addf %24, %30 : vector<256x8xf32>
    %c0_32 = arith.constant 0 : index
    %c0_33 = arith.constant 0 : index
    %c2 = arith.constant 2 : index
    %c0_34 = arith.constant 0 : index
    %32 = vector.load %arg7[%c0_32, %c0_33, %c2, %c0_34] : memref<1x18x18x4xf32, #tpu.memory_space<vmem>>, vector<1x16x16x4xf32>
    %33 = vector.shape_cast %32 : vector<1x16x16x4xf32> to vector<16x16x4xf32>
    %34 = vector.shape_cast %33 : vector<16x16x4xf32> to vector<256x4xf32>
    %c2_35 = arith.constant 2 : index
    %c0_36 = arith.constant 0 : index
    %c0_37 = arith.constant 0 : index
    %35 = vector.load %arg4[%c2_35, %c0_36, %c0_37] : memref<9x4x8xf32, #tpu.memory_space<vmem>>, vector<1x4x8xf32>
    %36 = vector.shape_cast %35 : vector<1x4x8xf32> to vector<4x8xf32>
    %cst_38 = arith.constant dense<0.000000e+00> : vector<256x8xf32>
    %37 = tpu.matmul %34, %36, %cst_38 {dimension_numbers = #tpu.dot_dimension_numbers<[1], [0], [0], [1], [0, 0, 1, 1], [], []>} : vector<256x4xf32>, vector<4x8xf32>, vector<256x8xf32> -> vector<256x8xf32>
    %38 = arith.addf %31, %37 : vector<256x8xf32>
    %c0_39 = arith.constant 0 : index
    %c1_40 = arith.constant 1 : index
    %c0_41 = arith.constant 0 : index
    %c0_42 = arith.constant 0 : index
    %39 = vector.load %arg7[%c0_39, %c1_40, %c0_41, %c0_42] : memref<1x18x18x4xf32, #tpu.memory_space<vmem>>, vector<1x16x16x4xf32>
    %40 = vector.shape_cast %39 : vector<1x16x16x4xf32> to vector<16x16x4xf32>
    %41 = vector.shape_cast %40 : vector<16x16x4xf32> to vector<256x4xf32>
    %c3 = arith.constant 3 : index
    %c0_43 = arith.constant 0 : index
    %c0_44 = arith.constant 0 : index
    %42 = vector.load %arg4[%c3, %c0_43, %c0_44] : memref<9x4x8xf32, #tpu.memory_space<vmem>>, vector<1x4x8xf32>
    %43 = vector.shape_cast %42 : vector<1x4x8xf32> to vector<4x8xf32>
    %cst_45 = arith.constant dense<0.000000e+00> : vector<256x8xf32>
    %44 = tpu.matmul %41, %43, %cst_45 {dimension_numbers = #tpu.dot_dimension_numbers<[1], [0], [0], [1], [0, 0, 1, 1], [], []>} : vector<256x4xf32>, vector<4x8xf32>, vector<256x8xf32> -> vector<256x8xf32>
    %45 = arith.addf %38, %44 : vector<256x8xf32>
    %c0_46 = arith.constant 0 : index
    %c1_47 = arith.constant 1 : index
    %c1_48 = arith.constant 1 : index
    %c0_49 = arith.constant 0 : index
    %46 = vector.load %arg7[%c0_46, %c1_47, %c1_48, %c0_49] : memref<1x18x18x4xf32, #tpu.memory_space<vmem>>, vector<1x16x16x4xf32>
    %47 = vector.shape_cast %46 : vector<1x16x16x4xf32> to vector<16x16x4xf32>
    %48 = vector.shape_cast %47 : vector<16x16x4xf32> to vector<256x4xf32>
    %c4 = arith.constant 4 : index
    %c0_50 = arith.constant 0 : index
    %c0_51 = arith.constant 0 : index
    %49 = vector.load %arg4[%c4, %c0_50, %c0_51] : memref<9x4x8xf32, #tpu.memory_space<vmem>>, vector<1x4x8xf32>
    %50 = vector.shape_cast %49 : vector<1x4x8xf32> to vector<4x8xf32>
    %cst_52 = arith.constant dense<0.000000e+00> : vector<256x8xf32>
    %51 = tpu.matmul %48, %50, %cst_52 {dimension_numbers = #tpu.dot_dimension_numbers<[1], [0], [0], [1], [0, 0, 1, 1], [], []>} : vector<256x4xf32>, vector<4x8xf32>, vector<256x8xf32> -> vector<256x8xf32>
    %52 = arith.addf %45, %51 : vector<256x8xf32>
    %c0_53 = arith.constant 0 : index
    %c1_54 = arith.constant 1 : index
    %c2_55 = arith.constant 2 : index
    %c0_56 = arith.constant 0 : index
    %53 = vector.load %arg7[%c0_53, %c1_54, %c2_55, %c0_56] : memref<1x18x18x4xf32, #tpu.memory_space<vmem>>, vector<1x16x16x4xf32>
    %54 = vector.shape_cast %53 : vector<1x16x16x4xf32> to vector<16x16x4xf32>
    %55 = vector.shape_cast %54 : vector<16x16x4xf32> to vector<256x4xf32>
    %c5 = arith.constant 5 : index
    %c0_57 = arith.constant 0 : index
    %c0_58 = arith.constant 0 : index
    %56 = vector.load %arg4[%c5, %c0_57, %c0_58] : memref<9x4x8xf32, #tpu.memory_space<vmem>>, vector<1x4x8xf32>
    %57 = vector.shape_cast %56 : vector<1x4x8xf32> to vector<4x8xf32>
    %cst_59 = arith.constant dense<0.000000e+00> : vector<256x8xf32>
    %58 = tpu.matmul %55, %57, %cst_59 {dimension_numbers = #tpu.dot_dimension_numbers<[1], [0], [0], [1], [0, 0, 1, 1], [], []>} : vector<256x4xf32>, vector<4x8xf32>, vector<256x8xf32> -> vector<256x8xf32>
    %59 = arith.addf %52, %58 : vector<256x8xf32>
    %c0_60 = arith.constant 0 : index
    %c2_61 = arith.constant 2 : index
    %c0_62 = arith.constant 0 : index
    %c0_63 = arith.constant 0 : index
    %60 = vector.load %arg7[%c0_60, %c2_61, %c0_62, %c0_63] : memref<1x18x18x4xf32, #tpu.memory_space<vmem>>, vector<1x16x16x4xf32>
    %61 = vector.shape_cast %60 : vector<1x16x16x4xf32> to vector<16x16x4xf32>
    %62 = vector.shape_cast %61 : vector<16x16x4xf32> to vector<256x4xf32>
    %c6 = arith.constant 6 : index
    %c0_64 = arith.constant 0 : index
    %c0_65 = arith.constant 0 : index
    %63 = vector.load %arg4[%c6, %c0_64, %c0_65] : memref<9x4x8xf32, #tpu.memory_space<vmem>>, vector<1x4x8xf32>
    %64 = vector.shape_cast %63 : vector<1x4x8xf32> to vector<4x8xf32>
    %cst_66 = arith.constant dense<0.000000e+00> : vector<256x8xf32>
    %65 = tpu.matmul %62, %64, %cst_66 {dimension_numbers = #tpu.dot_dimension_numbers<[1], [0], [0], [1], [0, 0, 1, 1], [], []>} : vector<256x4xf32>, vector<4x8xf32>, vector<256x8xf32> -> vector<256x8xf32>
    %66 = arith.addf %59, %65 : vector<256x8xf32>
    %c0_67 = arith.constant 0 : index
    %c2_68 = arith.constant 2 : index
    %c1_69 = arith.constant 1 : index
    %c0_70 = arith.constant 0 : index
    %67 = vector.load %arg7[%c0_67, %c2_68, %c1_69, %c0_70] : memref<1x18x18x4xf32, #tpu.memory_space<vmem>>, vector<1x16x16x4xf32>
    %68 = vector.shape_cast %67 : vector<1x16x16x4xf32> to vector<16x16x4xf32>
    %69 = vector.shape_cast %68 : vector<16x16x4xf32> to vector<256x4xf32>
    %c7 = arith.constant 7 : index
    %c0_71 = arith.constant 0 : index
    %c0_72 = arith.constant 0 : index
    %70 = vector.load %arg4[%c7, %c0_71, %c0_72] : memref<9x4x8xf32, #tpu.memory_space<vmem>>, vector<1x4x8xf32>
    %71 = vector.shape_cast %70 : vector<1x4x8xf32> to vector<4x8xf32>
    %cst_73 = arith.constant dense<0.000000e+00> : vector<256x8xf32>
    %72 = tpu.matmul %69, %71, %cst_73 {dimension_numbers = #tpu.dot_dimension_numbers<[1], [0], [0], [1], [0, 0, 1, 1], [], []>} : vector<256x4xf32>, vector<4x8xf32>, vector<256x8xf32> -> vector<256x8xf32>
    %73 = arith.addf %66, %72 : vector<256x8xf32>
    %c0_74 = arith.constant 0 : index
    %c2_75 = arith.constant 2 : index
    %c2_76 = arith.constant 2 : index
    %c0_77 = arith.constant 0 : index
    %74 = vector.load %arg7[%c0_74, %c2_75, %c2_76, %c0_77] : memref<1x18x18x4xf32, #tpu.memory_space<vmem>>, vector<1x16x16x4xf32>
    %75 = vector.shape_cast %74 : vector<1x16x16x4xf32> to vector<16x16x4xf32>
    %76 = vector.shape_cast %75 : vector<16x16x4xf32> to vector<256x4xf32>
    %c8 = arith.constant 8 : index
    %c0_78 = arith.constant 0 : index
    %c0_79 = arith.constant 0 : index
    %77 = vector.load %arg4[%c8, %c0_78, %c0_79] : memref<9x4x8xf32, #tpu.memory_space<vmem>>, vector<1x4x8xf32>
    %78 = vector.shape_cast %77 : vector<1x4x8xf32> to vector<4x8xf32>
    %cst_80 = arith.constant dense<0.000000e+00> : vector<256x8xf32>
    %79 = tpu.matmul %76, %78, %cst_80 {dimension_numbers = #tpu.dot_dimension_numbers<[1], [0], [0], [1], [0, 0, 1, 1], [], []>} : vector<256x4xf32>, vector<4x8xf32>, vector<256x8xf32> -> vector<256x8xf32>
    %80 = arith.addf %73, %79 : vector<256x8xf32>
    %c0_81 = arith.constant 0 : index
    %c0_82 = arith.constant 0 : index
    %81 = vector.load %arg5[%c0_81, %c0_82] : memref<1x8xf32, #tpu.memory_space<vmem>>, vector<1x8xf32>
    %82 = vector.broadcast %81 : vector<1x8xf32> to vector<256x8xf32>
    %83 = arith.addf %80, %82 : vector<256x8xf32>
    %84 = vector.shape_cast %83 : vector<256x8xf32> to vector<1x16x16x8xf32>
    %c0_83 = arith.constant 0 : index
    %c0_84 = arith.constant 0 : index
    %c0_85 = arith.constant 0 : index
    %c0_86 = arith.constant 0 : index
    %85 = vector.load %arg6[%c0_83, %c0_84, %c0_85, %c0_86] : memref<1x16x16x8xf32, #tpu.memory_space<vmem>>, vector<1x16x16x8xf32>
    tpu.vector_store %arg6[%c0_83, %c0_84, %c0_85, %c0_86], %84 {strides = array<i32>} : memref<1x16x16x8xf32, #tpu.memory_space<vmem>>, vector<1x16x16x8xf32>,
    return
  }
  func.func @transform_0(%arg0: i32) -> (i32, i32, i32, i32) {
    %c0_i32 = arith.constant 0 : i32
    %c0_i32_0 = arith.constant 0 : i32
    %c0_i32_1 = arith.constant 0 : i32
    %c0_i32_2 = arith.constant 0 : i32
    return %arg0, %c0_i32, %c0_i32_0, %c0_i32_1 : i32, i32, i32, i32
  }
  func.func @transform_1(%arg0: i32) -> (i32, i32) {
    %c0_i32 = arith.constant 0 : i32
    %c0_i32_0 = arith.constant 0 : i32
    %c0_i32_1 = arith.constant 0 : i32
    return %c0_i32, %c0_i32_0 : i32, i32
  }
  func.func @transform_2(%arg0: i32) -> (i32, i32) {
    %c0_i32 = arith.constant 0 : i32
    %c0_i32_0 = arith.constant 0 : i32
    %c0_i32_1 = arith.constant 0 : i32
    return %c0_i32, %c0_i32_0 : i32, i32
  }
  func.func @transform_3(%arg0: i32) -> (i32, i32, i32) {
    %c0_i32 = arith.constant 0 : i32
    %c0_i32_0 = arith.constant 0 : i32
    %c0_i32_1 = arith.constant 0 : i32
    %c0_i32_2 = arith.constant 0 : i32
    return %c0_i32, %c0_i32_0, %c0_i32_1 : i32, i32, i32
  }
  func.func @transform_4(%arg0: i32) -> (i32, i32) {
    %c0_i32 = arith.constant 0 : i32
    %c0_i32_0 = arith.constant 0 : i32
    %c0_i32_1 = arith.constant 0 : i32
    return %c0_i32, %c0_i32_0 : i32, i32
  }
  func.func @transform_5(%arg0: i32) -> (i32, i32, i32, i32) {
    %c0_i32 = arith.constant 0 : i32
    %c0_i32_0 = arith.constant 0 : i32
    %c0_i32_1 = arith.constant 0 : i32
    %c0_i32_2 = arith.constant 0 : i32
    return %arg0, %c0_i32, %c0_i32_0, %c0_i32_1 : i32, i32, i32, i32
  }
}

</mosaic_0001>

<bundles_post_ra>
// kernel: tpu_custom_call.1
= control target key start
LH: loop header
LB: loop body
LE: loop exit
PB: predicated region body
PF: predicated region fallthrough
CT: control target
= control target key end

     0   :  { %s5404_s18 = smov 0   ;;  %s6553_s0 = inlined_call_operand.vmem [shape: f32[2,16,16,4], index: 0, kind: input, shape index: {}]   ;;  %s6554_s1 = inlined_call_operand.vmem [shape: f32[1,4], index: 1, kind: input, shape index: {}]   ;;  %s6555_s2 = inlined_call_operand.vmem [shape: f32[1,4], index: 2, kind: input, shape index: {}]   ;;  %s6556_s3 = inlined_call_operand.vmem [shape: f32[9,4,8], index: 3, kind: input, shape index: {}]   ;;  %s6557_s4 = inlined_call_operand.vmem [shape: f32[1,8], index: 4, kind: input, shape index: {}]   ;;  %s6558_s5 = inlined_call_operand.vmem [shape: f32[2,16,16,8], index: 5, kind: output, shape index: {}]  }
   0x1 LB: > { %s4030_s19 = sadd.s32 4294967295, %s5371_s18   ;;  %p4034_p0 = scmp.ge.s32.totalorder %s5371_s18, 1  ;;  %s5371_s18 = sphi %s5404_s18, %s15_s18  }
   0x2   : > { %p187_p1 = scmp.lt.s32.totalorder %s5371_s18, 3 }
   0x4   : > { %p188_p2 = pnand %p4034_p0, %p187_p1 }
   0x6   : > { %191 = sbr.rel (%p188_p2) target bundleno = 552 (0x228), region = 40 }
   0xd   : > { %v4041_v0 = vld [vmem:[%s6556_s3 + $0x4] sm:$0xf]  ;;  %vm619_vm0 = vcmask 1043456   ;;  %vm225_vm1 = vcmask 31744   ;;  %vm228_vm2 = vcmask 25600   ;;  %v5373_v1 = vmov 0.0  }
   0xe   : > { %4648 = vmatprep.subr.msk.mxu1 %vm619_vm0, %v4041_v0  ;;  %226 = vst.msk [vmem:[#allocation2] sm:$0xff] %vm225_vm1, %v5373_v1  ;;  %227 = vst.msk [vmem:[#allocation2 + $0x8] sm:$0xff] %vm225_vm1, %v5373_v1  ;;  %v5473_v2 = vld [vmem:[%s6556_s3 + $0x10] sm:$0xf]  ;;  %p215_p3 = scmp.lt.s32.totalorder %s4030_s19, 1  ;;  %vm3942_vm3 = vcmask 64512  }
   0xf   : > { %230 = vst.msk [vmem:[#allocation2 + $0x18] sm:$0xff] %vm225_vm1, %v5373_v1  ;;  %231 = vst.msk [vmem:[#allocation2 + $0x20] sm:$0xff] %vm225_vm1, %v5373_v1  ;;  %4649 = vmatpush3.msk.msra.mxu1 %vm619_vm0, %v4041_v0  ;;  %4848 = vmatprep.subr.msk.mxu0 %vm619_vm0, %v5473_v2  ;;  %v488_v3 = vld [vmem:[%s6556_s3] sm:$0xf]  ;;  %v5486_v4 = vld [vmem:[%s6556_s3 + $0x14] sm:$0xf] }
  0x10   : > { %233 = vst.msk [vmem:[#allocation2 + $0x30] sm:$0xff] %vm225_vm1, %v5373_v1  ;;  %234 = vst.msk [vmem:[#allocation2 + $0x38] sm:$0xff] %vm225_vm1, %v5373_v1  ;;  %4849 = vmatpush3.msk.msra.mxu0 %vm619_vm0, %v5473_v2  ;;  %s6664_s19 = smov (!%p215_p3, %s4030_s19), 1  ;;  %4698 = vmatprep.subr.msk.mxu1 %vm619_vm0, %v488_v3  ;;  %v5501_v5 = vld [vmem:[%s6554_s1] ss:$0 sm:$0xff] }
  0x11   : > { %236 = vst.msk [vmem:[#allocation2 + $0x48] sm:$0xff] %vm225_vm1, %v5373_v1  ;;  %237 = vst.msk [vmem:[#allocation2 + $0x50] sm:$0xff] %vm225_vm1, %v5373_v1  ;;  %4898 = vmatprep.subr.msk.mxu0 %vm619_vm0, %v5486_v4  ;;  %s4349_s28 = sshll.u32 %s6664_s19, 8  ;;  %v5513_v6 = vld [vmem:[%s6555_s2] ss:$0 sm:$0xff] }
  0x12   : > { %239 = vst.msk [vmem:[#allocation2 + $0x60] sm:$0xff] %vm225_vm1, %v5373_v1  ;;  %240 = vst.msk [vmem:[#allocation2 + $0x68] sm:$0xff] %vm225_vm1, %v5373_v1  ;;  %s5508_s8 = scalar_lea.vmem %s6553_s0, %s4349_s28  ;;  %v5521_v10 = vld [vmem:[%s6556_s3 + $0x8] sm:$0xf]  ;;  %s6451_s27 = scalar_lea.vmem %s6558_s5, %s4349_s28 }
  0x13   : > { %242 = vst.msk [vmem:[#allocation2 + $0x78] sm:$0xff] %vm225_vm1, %v5373_v1  ;;  %243 = vst.msk [vmem:[#allocation2 + $0x80] sm:$0xff] %vm225_vm1, %v5373_v1  ;;  %v283_v7 = vld [vmem:[%s5508_s8] sm:$0xff]  ;;  %v284_v8 = vld [vmem:[%s5508_s8 + $0x8] sm:$0xff] }
  0x14   : > { %245 = vst.msk [vmem:[#allocation2 + $0x90] sm:$0xff] %vm225_vm1, %v5373_v1  ;;  %246 = vst.msk [vmem:[#allocation2 + $0x98] sm:$0xff] %vm225_vm1, %v5373_v1  ;;  %v285_v9 = vld [vmem:[%s5508_s8 + $0x10] sm:$0xff]  ;;  %v321_v13 = vmul.f32 %v5501_v5, %v283_v7  ;;  %v322_v14 = vmul.f32 %v5501_v5, %v284_v8  ;;  %v286_v16 = vld [vmem:[%s5508_s8 + $0x18] sm:$0xff] }
  0x15   : > { %248 = vst.msk [vmem:[#allocation2 + $0xa8] sm:$0xff] %vm225_vm1, %v5373_v1  ;;  %249 = vst.msk [vmem:[#allocation2 + $0xb0] sm:$0xff] %vm225_vm1, %v5373_v1  ;;  %v489_v11 = vld [vmem:[#allocation2 + $0x1] sm:$0xff]  ;;  %v323_v15 = vmul.f32 %v5501_v5, %v285_v9  ;;  %v324_v17 = vmul.f32 %v5501_v5, %v286_v16  ;;  %v289_v20 = vld [vmem:[%s5508_s8 + $0x30] sm:$0xff] }
  0x16   : > { %251 = vst.msk [vmem:[#allocation2 + $0xc0] sm:$0xff] %vm225_vm1, %v5373_v1  ;;  %252 = vst.msk [vmem:[#allocation2 + $0xc8] sm:$0xff] %vm225_vm1, %v5373_v1  ;;  %4650 = vmatprep.mubr.msk.f32.mxu1 %vm225_vm1, %v489_v11  ;;  %v287_v18 = vld [vmem:[%s5508_s8 + $0x20] sm:$0xff]  ;;  %v288_v19 = vld [vmem:[%s5508_s8 + $0x28] sm:$0xff]  ;;  %v359_v21 = vadd.f32 %v5513_v6, %v321_v13  ;;  %v360_v22 = vadd.f32 %v5513_v6, %v322_v14  ;;  %v327_v28 = vmul.f32 %v5501_v5, %v289_v20 }
  0x17   : > { %254 = vst.msk [vmem:[#allocation2 + $0xd8] sm:$0xff] %vm225_vm1, %v5373_v1  ;;  %255 = vst.msk [vmem:[#allocation2 + $0xe0] sm:$0xff] %vm225_vm1, %v5373_v1  ;;  %v361_v23 = vadd.f32 %v5513_v6, %v323_v15  ;;  %v325_v24 = vmul.f32 %v5501_v5, %v287_v18  ;;  %v290_v25 = vld [vmem:[%s5508_s8 + $0x38] sm:$0xff]  ;;  %v362_v26 = vadd.f32 %v5513_v6, %v324_v17  ;;  %v291_v30 = vld [vmem:[%s5508_s8 + $0x40] sm:$0xff] }
  0x18   : > { %257 = vst.msk [vmem:[#allocation2 + $0xf0] sm:$0xff] %vm225_vm1, %v5373_v1  ;;  %258 = vst.msk [vmem:[#allocation2 + $0xf8] sm:$0xff] %vm225_vm1, %v5373_v1  ;;  %v326_v27 = vmul.f32 %v5501_v5, %v288_v19  ;;  %v328_v29 = vmul.f32 %v5501_v5, %v290_v25  ;;  %v292_v31 = vld [vmem:[%s5508_s8 + $0x48] sm:$0xff]  ;;  %v293_v32 = vld [vmem:[%s5508_s8 + $0x50] sm:$0xff]  ;;  %v391_v33 = vmax.f32 %v359_v21, 0.0  ;;  %v392_v34 = vmax.f32 %v360_v22, 0.0 }
  0x19   : > { %260 = vst.msk [vmem:[#allocation2 + $0x108] sm:$0xff] %vm225_vm1, %v5373_v1  ;;  %261 = vst.msk [vmem:[#allocation2 + $0x110] sm:$0xff] %vm225_vm1, %v5373_v1  ;;  %v393_v35 = vmax.f32 %v361_v23, 0.0  ;;  %v363_v36 = vadd.f32 %v5513_v6, %v325_v24  ;;  %v294_v37 = vld [vmem:[%s5508_s8 + $0x58] sm:$0xff]  ;;  %v394_v38 = vmax.f32 %v362_v26, 0.0  ;;  %v365_v40 = vadd.f32 %v5513_v6, %v327_v28  ;;  %v295_v42 = vld [vmem:[%s5508_s8 + $0x60] sm:$0xff] }
  0x1a   : > { %263 = vst.msk [vmem:[#allocation2 + $0x120] sm:$0xff] %vm225_vm1, %v5373_v1  ;;  %264 = vst.msk [vmem:[#allocation2 + $0x128] sm:$0xff] %vm225_vm1, %v5373_v1  ;;  %v364_v39 = vadd.f32 %v5513_v6, %v326_v27  ;;  %v366_v41 = vadd.f32 %v5513_v6, %v328_v29  ;;  %v329_v44 = vmul.f32 %v5501_v5, %v291_v30  ;;  %v296_v47 = vld [vmem:[%s5508_s8 + $0x68] sm:$0xff]  ;;  %v297_v48 = vld [vmem:[%s5508_s8 + $0x70] sm:$0xff] }
  0x1b   : > { %266 = vst.msk [vmem:[#allocation2 + $0x138] sm:$0xff] %vm225_vm1, %v5373_v1  ;;  %267 = vst.msk [vmem:[#allocation2 + $0x140] sm:$0xff] %vm225_vm1, %v5373_v1  ;;  %v395_v43 = vmax.f32 %v363_v36, 0.0  ;;  %v330_v45 = vmul.f32 %v5501_v5, %v292_v31  ;;  %v331_v46 = vmul.f32 %v5501_v5, %v293_v32  ;;  %v298_v49 = vld [vmem:[%s5508_s8 + $0x78] sm:$0xff]  ;;  %v397_v51 = vmax.f32 %v365_v40, 0.0  ;;  %v299_v62 = vld [vmem:[%s5508_s8 + $0x80] sm:$0xff] }
  0x1c   : > { %269 = vst.msk [vmem:[#allocation2 + $0x150] sm:$0xff] %vm225_vm1, %v5373_v1  ;;  %270 = vst.msk [vmem:[#allocation2 + $0x158] sm:$0xff] %vm225_vm1, %v5373_v1  ;;  %v396_v50 = vmax.f32 %v364_v39, 0.0  ;;  %v398_v52 = vmax.f32 %v366_v41, 0.0  ;;  %v332_v53 = vmul.f32 %v5501_v5, %v294_v37  ;;  %v367_v54 = vadd.f32 %v5513_v6, %v329_v44  ;;  %v300_v63 = vld [vmem:[%s5508_s8 + $0x88] sm:$0xff]  ;;  %v301_v0 = vld [vmem:[%s5508_s8 + $0x90] sm:$0xff] }
  0x1d   : > { %272 = vst.msk [vmem:[#allocation2 + $0x168] sm:$0xff] %vm225_vm1, %v5373_v1  ;;  %273 = vst.msk [vmem:[#allocation2 + $0x170] sm:$0xff] %vm225_vm1, %v5373_v1  ;;  %v368_v55 = vadd.f32 %v5513_v6, %v330_v45  ;;  %v369_v56 = vadd.f32 %v5513_v6, %v331_v46  ;;  %v333_v57 = vmul.f32 %v5501_v5, %v295_v42  ;;  %v302_v9 = vld [vmem:[%s5508_s8 + $0x98] sm:$0xff]  ;;  %v303_v19 = vld [vmem:[%s5508_s8 + $0xa0] sm:$0xff] }
  0x1e   : > { %275 = vst.msk [vmem:[#allocation2 + $0x180] sm:$0xff] %vm225_vm1, %v5373_v1  ;;  %276 = vst.msk [vmem:[#allocation2 + $0x188] sm:$0xff] %vm225_vm1, %v5373_v1  ;;  %v370_v58 = vadd.f32 %v5513_v6, %v332_v53  ;;  %v334_v59 = vmul.f32 %v5501_v5, %v296_v47  ;;  %v335_v60 = vmul.f32 %v5501_v5, %v297_v48  ;;  %v304_v20 = vld [vmem:[%s5508_s8 + $0xa8] sm:$0xff]  ;;  %v305_v21 = vld [vmem:[%s5508_s8 + $0xb0] sm:$0xff] }
  0x1f   : > { %278 = vst.msk [vmem:[#allocation2 + $0x198] sm:$0xff] %vm225_vm1, %v5373_v1  ;;  %279 = vst.msk [vmem:[#allocation2 + $0x1a0] sm:$0xff] %vm225_vm1, %v5373_v1  ;;  %v336_v61 = vmul.f32 %v5501_v5, %v298_v49  ;;  %v401_v7 = vmax.f32 %v369_v56, 0.0  ;;  %v371_v8 = vadd.f32 %v5513_v6, %v333_v57  ;;  %v337_v16 = vmul.f32 %v5501_v5, %v299_v62  ;;  %v5605_v30 = vld [vmem:[%s6556_s3 + $0x18] sm:$0xf]  ;;  %v307_v37 = vld [vmem:[%s5508_s8 + $0xc0] sm:$0xff] }
  0x20   : > { %229 = vst.msk [vmem:[#allocation2 + $0x10] sm:$0x3] %vm228_vm2, %v5373_v1  ;;  %232 = vst.msk [vmem:[#allocation2 + $0x28] sm:$0x3] %vm228_vm2, %v5373_v1  ;;  %v402_v11 = vmax.f32 %v370_v58, 0.0  ;;  %v373_v13 = vadd.f32 %v5513_v6, %v335_v60  ;;  %v338_v17 = vmul.f32 %v5501_v5, %v300_v63  ;;  %v339_v18 = vmul.f32 %v5501_v5, %v301_v0  ;;  %v309_v39 = vld [vmem:[%s5508_s8 + $0xd0] sm:$0xff] }
  0x21   : > { %235 = vst.msk [vmem:[#allocation2 + $0x40] sm:$0x3] %vm228_vm2, %v5373_v1  ;;  %238 = vst.msk [vmem:[#allocation2 + $0x58] sm:$0x3] %vm228_vm2, %v5373_v1  ;;  %v374_v14 = vadd.f32 %v5513_v6, %v336_v61  ;;  %v403_v15 = vmax.f32 %v371_v8, 0.0  ;;  %v340_v28 = vmul.f32 %v5501_v5, %v302_v9  ;;  %v375_v29 = vadd.f32 %v5513_v6, %v337_v16  ;;  %v310_v45 = vld [vmem:[%s5508_s8 + $0xd8] sm:$0xff] }
  0x22   : > { %241 = vst.msk [vmem:[#allocation2 + $0x70] sm:$0x3] %vm228_vm2, %v5373_v1  ;;  %244 = vst.msk [vmem:[#allocation2 + $0x88] sm:$0x3] %vm228_vm2, %v5373_v1  ;;  %v405_v26 = vmax.f32 %v373_v13, 0.0  ;;  %v376_v31 = vadd.f32 %v5513_v6, %v338_v17  ;;  %v377_v32 = vadd.f32 %v5513_v6, %v339_v18  ;;  %v342_v36 = vmul.f32 %v5501_v5, %v304_v20  ;;  %v313_v60 = vld [vmem:[%s5508_s8 + $0xf0] sm:$0xff] }
  0x23   : > { %247 = vst.msk [vmem:[#allocation2 + $0xa0] sm:$0x3] %vm228_vm2, %v5373_v1  ;;  %250 = vst.msk [vmem:[#allocation2 + $0xb8] sm:$0x3] %vm228_vm2, %v5373_v1  ;;  %v406_v27 = vmax.f32 %v374_v14, 0.0  ;;  %v407_v41 = vmax.f32 %v375_v29, 0.0  ;;  %v343_v44 = vmul.f32 %v5501_v5, %v305_v21  ;;  %v347_v53 = vmul.f32 %v5501_v5, %v309_v39 }
  0x24   : > { %253 = vst.msk [vmem:[#allocation2 + $0xd0] sm:$0x3] %vm228_vm2, %v5373_v1  ;;  %256 = vst.msk [vmem:[#allocation2 + $0xe8] sm:$0x3] %vm228_vm2, %v5373_v1  ;;  %v408_v42 = vmax.f32 %v376_v31, 0.0  ;;  %v380_v48 = vadd.f32 %v5513_v6, %v342_v36  ;;  %v351_v16 = vmul.f32 %v5501_v5, %v313_v60 }
  0x25   : > { %259 = vst.msk [vmem:[#allocation2 + $0x100] sm:$0x3] %vm228_vm2, %v5373_v1  ;;  %262 = vst.msk [vmem:[#allocation2 + $0x118] sm:$0x3] %vm228_vm2, %v5373_v1 }
  0x26   : > { %265 = vst.msk [vmem:[#allocation2 + $0x130] sm:$0x3] %vm228_vm2, %v5373_v1  ;;  %268 = vst.msk [vmem:[#allocation2 + $0x148] sm:$0x3] %vm228_vm2, %v5373_v1  ;;  %v412_v57 = vmax.f32 %v380_v48, 0.0 }
  0x27   : > { %271 = vst.msk [vmem:[#allocation2 + $0x160] sm:$0x3] %vm228_vm2, %v5373_v1  ;;  %274 = vst.msk [vmem:[#allocation2 + $0x178] sm:$0x3] %vm228_vm2, %v5373_v1  ;;  %v490_v12 = vld [vmem:[#allocation2 + $0x9] sm:$0xff] }
  0x28   : > { %277 = vst.msk [vmem:[#allocation2 + $0x190] sm:$0x3] %vm228_vm2, %v5373_v1  ;;  %280 = vst.msk [vmem:[#allocation2 + $0x1a8] sm:$0x3] %vm228_vm2, %v5373_v1  ;;  %4651 = vmatmul.mubr.msk.f32.vlgmr.msra.gmra.mrb[0].mxu1 %vm225_vm1, %v490_v12  ;;  %v399_v1 = vmax.f32 %v367_v54, 0.0  ;;  %v372_v12 = vadd.f32 %v5513_v6, %v334_v59  ;;  %v311_v54 = vld [vmem:[%s5508_s8 + $0xe0] sm:$0xff]  ;;  %v348_v59 = vmul.f32 %v5501_v5, %v310_v45 }
  0x29   : > { %4699 = vmatpush3.msk.msra.mxu1 %vm619_vm0, %v488_v3  ;;  %424 = vst.msk [vmem:[#allocation2 + $0x19] sm:$0xff] %vm225_vm1, %v391_v33  ;;  %425 = vst.msk [vmem:[#allocation2 + $0x21] sm:$0xff] %vm225_vm1, %v392_v34  ;;  %v400_v3 = vmax.f32 %v368_v55, 0.0  ;;  %v306_v33 = vld [vmem:[%s5508_s8 + $0xb8] sm:$0xff]  ;;  %v378_v34 = vadd.f32 %v5513_v6, %v340_v28  ;;  %v312_v55 = vld [vmem:[%s5508_s8 + $0xe8] sm:$0xff] }
  0x2a   : > { %4748 = vmatprep.subr.msk.mxu1 %vm619_vm0, %v5521_v10  ;;  %426 = vst.msk [vmem:[#allocation2 + $0x31] sm:$0xff] %vm225_vm1, %v393_v35  ;;  %427 = vst.msk [vmem:[#allocation2 + $0x39] sm:$0xff] %vm225_vm1, %v394_v38  ;;  %v404_v25 = vmax.f32 %v372_v12, 0.0  ;;  %v341_v35 = vmul.f32 %v5501_v5, %v303_v19  ;;  %v308_v38 = vld [vmem:[%s5508_s8 + $0xc8] sm:$0xff]  ;;  %v344_v49 = vmul.f32 %v5501_v5, %v306_v33 }
  0x2b   : > { %428 = vst.msk [vmem:[#allocation2 + $0x49] sm:$0xff] %vm225_vm1, %v395_v43  ;;  %429 = vst.msk [vmem:[#allocation2 + $0x51] sm:$0xff] %vm225_vm1, %v396_v50  ;;  %v409_v43 = vmax.f32 %v377_v32, 0.0  ;;  %v381_v50 = vadd.f32 %v5513_v6, %v343_v44  ;;  %v386_v9 = vadd.f32 %v5513_v6, %v348_v59  ;;  %v350_v12 = vmul.f32 %v5501_v5, %v312_v55 }
  0x2c   : > { %430 = vst.msk [vmem:[#allocation2 + $0x61] sm:$0xff] %vm225_vm1, %v397_v51  ;;  %431 = vst.msk [vmem:[#allocation2 + $0x69] sm:$0xff] %vm225_vm1, %v398_v52  ;;  %v379_v47 = vadd.f32 %v5513_v6, %v341_v35  ;;  %v345_v51 = vmul.f32 %v5501_v5, %v307_v37  ;;  %v346_v52 = vmul.f32 %v5501_v5, %v308_v38 }
  0x2d   : > { %432 = vst.msk [vmem:[#allocation2 + $0x79] sm:$0xff] %vm225_vm1, %v399_v1  ;;  %433 = vst.msk [vmem:[#allocation2 + $0x81] sm:$0xff] %vm225_vm1, %v400_v3  ;;  %v382_v58 = vadd.f32 %v5513_v6, %v344_v49  ;;  %v413_v62 = vmax.f32 %v381_v50, 0.0  ;;  %v385_v1 = vadd.f32 %v5513_v6, %v347_v53  ;;  %v314_v3 = vld [vmem:[%s5508_s8 + $0xf8] sm:$0xff]  ;;  %v418_v17 = vmax.f32 %v386_v9, 0.0  ;;  %v457_v9 = vld [vmem:[#allocation2 + $0x8] sm:$0xff] }
  0x2e   : > { %434 = vst.msk [vmem:[#allocation2 + $0x91] sm:$0xff] %vm225_vm1, %v401_v7  ;;  %435 = vst.msk [vmem:[#allocation2 + $0x99] sm:$0xff] %vm225_vm1, %v402_v11  ;;  %v411_v56 = vmax.f32 %v379_v47, 0.0  ;;  %v383_v63 = vadd.f32 %v5513_v6, %v345_v51  ;;  %v384_v0 = vadd.f32 %v5513_v6, %v346_v52  ;;  %v349_v11 = vmul.f32 %v5501_v5, %v311_v54 }
  0x2f   : > { %436 = vst.msk [vmem:[#allocation2 + $0xa9] sm:$0xff] %vm225_vm1, %v403_v15  ;;  %437 = vst.msk [vmem:[#allocation2 + $0xb1] sm:$0xff] %vm225_vm1, %v404_v25  ;;  %v414_v8 = vmax.f32 %v382_v58, 0.0  ;;  %v417_v15 = vmax.f32 %v385_v1, 0.0  ;;  %v388_v19 = vadd.f32 %v5513_v6, %v350_v12  ;;  %v352_v20 = vmul.f32 %v5501_v5, %v314_v3  ;;  %v456_v3 = vld [vmem:[#allocation2] sm:$0xff] }
  0x30   : > { %v491_v22 = vld [vmem:[#allocation2 + $0x19] sm:$0xff]  ;;  %v492_v23 = vld [vmem:[#allocation2 + $0x21] sm:$0xff]  ;;  %438 = vst.msk [vmem:[#allocation2 + $0xc1] sm:$0xff] %vm225_vm1, %v405_v26  ;;  %439 = vst.msk [vmem:[#allocation2 + $0xc9] sm:$0xff] %vm225_vm1, %v406_v27  ;;  %v415_v13 = vmax.f32 %v383_v63, 0.0  ;;  %v416_v14 = vmax.f32 %v384_v0, 0.0  ;;  %v387_v18 = vadd.f32 %v5513_v6, %v349_v11 }
  0x31   : > { %v5594_v24 = vld [vmem:[#allocation2 + $0x31] sm:$0xff]  ;;  %4653 = vmatprep.mubr.msk.f32.mxu1 %vm225_vm1, %v491_v22  ;;  %4850 = vmatprep.mubr.msk.f32.mxu0 %vm225_vm1, %v491_v22  ;;  %v5625_v40 = vld [vmem:[#allocation2 + $0x39] sm:$0xff]  ;;  %440 = vst.msk [vmem:[#allocation2 + $0xd9] sm:$0xff] %vm225_vm1, %v407_v41  ;;  %441 = vst.msk [vmem:[#allocation2 + $0xe1] sm:$0xff] %vm225_vm1, %v408_v42  ;;  %v389_v22 = vadd.f32 %v5513_v6, %v351_v16  ;;  %v420_v25 = vmax.f32 %v388_v19, 0.0  ;;  %v390_v26 = vadd.f32 %v5513_v6, %v352_v20 }
  0x32   : > { %4654 = vmatmul.mubr.msk.f32.gmra.mrb[2].mxu1 %vm225_vm1, %v492_v23  ;;  %4851 = vmatmul.mubr.msk.f32.vlgmr.msra.gmra.mrb[0].mxu0 %vm225_vm1, %v492_v23  ;;  %v5631_v46 = vld [vmem:[#allocation2 + $0x49] sm:$0xff]  ;;  %442 = vst.msk [vmem:[#allocation2 + $0xf1] sm:$0xff] %vm225_vm1, %v409_v43  ;;  %v5659_v61 = vld [vmem:[#allocation2 + $0x51] sm:$0xff]  ;;  %444 = vst.msk [vmem:[#allocation2 + $0x109] sm:$0xff] %vm225_vm1, %v411_v56  ;;  %v419_v5 = vmax.f32 %v387_v18, 0.0 }
  0x33   : > { %4899 = vmatpush3.msk.msra.mxu0 %vm619_vm0, %v5486_v4  ;;  %4656 = vmatprep.mubr.msk.f32.mxu1 %vm225_vm1, %v5594_v24  ;;  %v410_v4 = vmax.f32 %v378_v34, 0.0  ;;  %v5665_v7 = vld [vmem:[#allocation2 + $0x61] sm:$0xff]  ;;  %445 = vst.msk [vmem:[#allocation2 + $0x111] sm:$0xff] %vm225_vm1, %v412_v57  ;;  %446 = vst.msk [vmem:[#allocation2 + $0x121] sm:$0xff] %vm225_vm1, %v413_v62  ;;  %v5686_v21 = vld [vmem:[#allocation2 + $0x69] sm:$0xff]  ;;  %v421_v27 = vmax.f32 %v389_v22, 0.0 }
  0x34   : > { %4853 = vmatprep.mubr.msk.f32.mxu0 %vm225_vm1, %v5594_v24  ;;  %4948 = vmatprep.subr.msk.mxu0 %vm619_vm0, %v5605_v30  ;;  %447 = vst.msk [vmem:[#allocation2 + $0x129] sm:$0xff] %vm225_vm1, %v414_v8  ;;  %448 = vst.msk [vmem:[#allocation2 + $0x139] sm:$0xff] %vm225_vm1, %v415_v13  ;;  %v5692_v23 = vld [vmem:[#allocation2 + $0x79] sm:$0xff]  ;;  %v422_v28 = vmax.f32 %v390_v26, 0.0  ;;  %v5706_v29 = vld [vmem:[#allocation2 + $0x81] sm:$0xff] }
  0x35   : > { %443 = vst.msk [vmem:[#allocation2 + $0xf9] sm:$0xff] %vm225_vm1, %v410_v4  ;;  %449 = vst.msk [vmem:[#allocation2 + $0x141] sm:$0xff] %vm225_vm1, %v416_v14  ;;  %v5709_v6 = vld [vmem:[#allocation2 + $0x91] sm:$0xff]  ;;  %v5720_v31 = vld [vmem:[#allocation2 + $0x99] sm:$0xff] }
  0x36   : > { %4657 = vmatmul.mubr.msk.f32.gmra.mrb[4].mxu1 %vm225_vm1, %v5625_v40  ;;  %4854 = vmatmul.mubr.msk.f32.gmra.mrb[2].mxu0 %vm225_vm1, %v5625_v40  ;;  %450 = vst.msk [vmem:[#allocation2 + $0x151] sm:$0xff] %vm225_vm1, %v417_v15  ;;  %451 = vst.msk [vmem:[#allocation2 + $0x159] sm:$0xff] %vm225_vm1, %v418_v17  ;;  %v5722_v32 = vld [vmem:[#allocation2 + $0xa9] sm:$0xff]  ;;  %v5732_v33 = vld [vmem:[#allocation2 + $0xb1] sm:$0xff] }
  0x37   : > { %4659 = vmatprep.mubr.msk.f32.mxu1 %vm225_vm1, %v5631_v46  ;;  %4856 = vmatprep.mubr.msk.f32.mxu0 %vm225_vm1, %v5631_v46  ;;  %452 = vst.msk [vmem:[#allocation2 + $0x169] sm:$0xff] %vm225_vm1, %v419_v5  ;;  %453 = vst.msk [vmem:[#allocation2 + $0x171] sm:$0xff] %vm225_vm1, %v420_v25  ;;  %v5734_v34 = vld [vmem:[#allocation2 + $0xc1] sm:$0xff]  ;;  %v5744_v35 = vld [vmem:[#allocation2 + $0xc9] sm:$0xff] }
  0x38   : > { %454 = vst.msk [vmem:[#allocation2 + $0x181] sm:$0xff] %vm225_vm1, %v421_v27  ;;  %455 = vst.msk [vmem:[#allocation2 + $0x189] sm:$0xff] %vm225_vm1, %v422_v28  ;;  %v5746_v36 = vld [vmem:[#allocation2 + $0xd9] sm:$0xff]  ;;  %v5758_v38 = vld [vmem:[#allocation2 + $0xe1] sm:$0xff] }
  0x39   : > { %6601 = vst [vmem:[#allocation3_spill] sm:$0xff] %v5744_v35  ;;  %6602 = vst [vmem:[#allocation4_spill] sm:$0xff] %v5746_v36  ;;  %v5748_v37 = vld [vmem:[#allocation2 + $0x1a] sm:$0xff]  ;;  %v5760_v39 = vld [vmem:[#allocation2 + $0x22] sm:$0xff] }
  0x3a   : > { %4660 = vmatmul.mubr.msk.f32.gmra.mrb[6].mxu1 %vm225_vm1, %v5659_v61  ;;  %4857 = vmatmul.mubr.msk.f32.gmra.mrb[4].mxu0 %vm225_vm1, %v5659_v61  ;;  %6603 = vst [vmem:[#allocation5_spill] sm:$0xff] %v5758_v38  ;;  %v5762_v41 = vld [vmem:[#allocation2 + $0xf1] sm:$0xff]  ;;  %v5769_v43 = vld [vmem:[%s6556_s3 + $0x1c] sm:$0xf]  ;;  %v5785_v4 = vld [vmem:[#allocation2 + $0x109] sm:$0xff] }
  0x3b   : > { %4662 = vmatprep.mubr.msk.f32.mxu1 %vm225_vm1, %v5665_v7  ;;  %4859 = vmatprep.mubr.msk.f32.mxu0 %vm225_vm1, %v5665_v7  ;;  %6604 = vst [vmem:[#allocation6_spill] sm:$0xff] %v5762_v41  ;;  %v5764_v42 = vld [vmem:[#allocation2 + $0x32] sm:$0xff]  ;;  %v5781_v45 = vld [vmem:[#allocation2 + $0x3a] sm:$0xff]  ;;  %6606 = vst [vmem:[#allocation8_spill] sm:$0xff] %v5785_v4 }
  0x3c   : > { %v5779_v44 = vld [vmem:[#allocation2 + $0xf9] sm:$0xff]  ;;  %v5787_v47 = vld [vmem:[#allocation2 + $0x4a] sm:$0xff]  ;;  %v5803_v49 = vld [vmem:[#allocation2 + $0x121] sm:$0xff] }
  0x3d   : > { %6605 = vst [vmem:[#allocation7_spill] sm:$0xff] %v5779_v44  ;;  %v5801_v48 = vld [vmem:[#allocation2 + $0x52] sm:$0xff]  ;;  %6608 = vst [vmem:[#allocation10_spill] sm:$0xff] %v5803_v49  ;;  %v5805_v50 = vld [vmem:[#allocation2 + $0x62] sm:$0xff] }
  0x3e   : > { %4663 = vmatmul.mubr.msk.f32.gmra.mrb[8].mxu1 %vm225_vm1, %v5686_v21  ;;  %4860 = vmatmul.mubr.msk.f32.gmra.mrb[6].mxu0 %vm225_vm1, %v5686_v21  ;;  %v5815_v51 = vld [vmem:[#allocation2 + $0x129] sm:$0xff]  ;;  %v5819_v53 = vld [vmem:[#allocation2 + $0x139] sm:$0xff]  ;;  %v5831_v55 = vld [vmem:[#allocation2 + $0x141] sm:$0xff] }
  0x3f   : > { %4665 = vmatprep.mubr.msk.f32.mxu1 %vm225_vm1, %v5692_v23  ;;  %4862 = vmatprep.mubr.msk.f32.mxu0 %vm225_vm1, %v5692_v23  ;;  %6609 = vst [vmem:[#allocation11_spill] sm:$0xff] %v5815_v51  ;;  %v5817_v52 = vld [vmem:[#allocation2 + $0x6a] sm:$0xff]  ;;  %6610 = vst [vmem:[#allocation12_spill] sm:$0xff] %v5819_v53  ;;  %v5821_v54 = vld [vmem:[#allocation2 + $0x7a] sm:$0xff] }
  0x40   : > { %6611 = vst [vmem:[#allocation13_spill] sm:$0xff] %v5831_v55  ;;  %v5833_v56 = vld [vmem:[#allocation2 + $0x82] sm:$0xff]  ;;  %v5835_v57 = vld [vmem:[#allocation2 + $0x151] sm:$0xff]  ;;  %v5847_v59 = vld [vmem:[#allocation2 + $0x159] sm:$0xff] }
  0x41   : > { %6612 = vst [vmem:[#allocation14_spill] sm:$0xff] %v5835_v57  ;;  %v5837_v58 = vld [vmem:[#allocation2 + $0x92] sm:$0xff]  ;;  %6613 = vst [vmem:[#allocation15_spill] sm:$0xff] %v5847_v59  ;;  %v5849_v60 = vld [vmem:[#allocation2 + $0x9a] sm:$0xff] }
  0x42   : > { %4666 = vmatmul.mubr.msk.f32.gmra.mrb[10].mxu1 %vm225_vm1, %v5706_v29  ;;  %4863 = vmatmul.mubr.msk.f32.gmra.mrb[8].mxu0 %vm225_vm1, %v5706_v29  ;;  %v5851_v62 = vld [vmem:[#allocation2 + $0x169] sm:$0xff]  ;;  %v5863_v0 = vld [vmem:[#allocation2 + $0x171] sm:$0xff]  ;;  %v5880_v13 = vld [vmem:[#allocation2 + $0xda] sm:$0xff] }
  0x43   : > { %4668 = vmatprep.mubr.msk.f32.mxu1 %vm225_vm1, %v5709_v6  ;;  %4865 = vmatprep.mubr.msk.f32.mxu0 %vm225_vm1, %v5709_v6  ;;  %6614 = vst [vmem:[#allocation16_spill] sm:$0xff] %v5851_v62  ;;  %v5853_v63 = vld [vmem:[#allocation2 + $0xaa] sm:$0xff]  ;;  %6615 = vst [vmem:[#allocation17_spill] sm:$0xff] %v5863_v0  ;;  %v5865_v1 = vld [vmem:[#allocation2 + $0xb2] sm:$0xff] }
  0x44   : > { %v5867_v8 = vld [vmem:[#allocation2 + $0xc2] sm:$0xff]  ;;  %v5876_v11 = vld [vmem:[#allocation2 + $0xca] sm:$0xff]  ;;  %v5878_v12 = vld [vmem:[#allocation2 + $0x18] sm:$0xff] }
  0x45   : > { %6616 = vst [vmem:[#allocation18_spill] sm:$0xff] %v5878_v12  ;;  %v5888_v14 = vld [vmem:[%s6556_s3 + $0xc] sm:$0xf]  ;;  %v5894_v15 = vld [vmem:[#allocation2 + $0x20] sm:$0xff]  ;;  %v5900_v17 = vld [vmem:[#allocation2 + $0x30] sm:$0xff] }
  0x46   : > { %4669 = vmatmul.mubr.msk.f32.gmra.mrb[12].mxu1 %vm225_vm1, %v5720_v31  ;;  %4866 = vmatmul.mubr.msk.f32.gmra.mrb[10].mxu0 %vm225_vm1, %v5720_v31  ;;  %6617 = vst [vmem:[#allocation19_spill] sm:$0xff] %v5894_v15  ;;  %v5896_v16 = vld [vmem:[#allocation2 + $0xe2] sm:$0xff]  ;;  %6618 = vst [vmem:[#allocation20_spill] sm:$0xff] %v5900_v17  ;;  %v5902_v18 = vld [vmem:[#allocation2 + $0xf2] sm:$0xff] }
  0x47   : > { %4671 = vmatprep.mubr.msk.f32.mxu1 %vm225_vm1, %v5722_v32  ;;  %4868 = vmatprep.mubr.msk.f32.mxu0 %vm225_vm1, %v5722_v32  ;;  %v5916_v19 = vld [vmem:[#allocation2 + $0xfa] sm:$0xff]  ;;  %v5918_v20 = vld [vmem:[#allocation2 + $0x48] sm:$0xff]  ;;  %v5930_v5 = vld [vmem:[#allocation2 + $0x50] sm:$0xff] }
  0x48   : > { %6620 = vst [vmem:[#allocation22_spill] sm:$0xff] %v5918_v20  ;;  %v5920_v22 = vld [vmem:[#allocation2 + $0x10a] sm:$0xff]  ;;  %6621 = vst [vmem:[#allocation23_spill] sm:$0xff] %v5930_v5  ;;  %v5932_v25 = vld [vmem:[#allocation2 + $0x112] sm:$0xff] }
  0x49   : > { %v5934_v26 = vld [vmem:[#allocation2 + $0x60] sm:$0xff]  ;;  %v5946_v28 = vld [vmem:[#allocation2 + $0x68] sm:$0xff] }
  0x4a   : > { %4672 = vmatmul.mubr.msk.f32.gmra.mrb[14].mxu1 %vm225_vm1, %v5732_v33  ;;  %4869 = vmatmul.mubr.msk.f32.gmra.mrb[12].mxu0 %vm225_vm1, %v5732_v33  ;;  %6622 = vst [vmem:[#allocation24_spill] sm:$0xff] %v5934_v26  ;;  %v5936_v27 = vld [vmem:[#allocation2 + $0x122] sm:$0xff]  ;;  %6623 = vst [vmem:[#allocation25_spill] sm:$0xff] %v5946_v28 }
  0x4b   : > { %4674 = vmatprep.mubr.msk.f32.mxu1 %vm225_vm1, %v5734_v34  ;;  %4871 = vmatprep.mubr.msk.f32.mxu0 %vm225_vm1, %v5734_v34 }
  0x4e   : > { %4675 = vmatmul.mubr.msk.f32.gmra.mrb[16].mxu1 %vm225_vm1, %v5744_v35  ;;  %4872 = vmatmul.mubr.msk.f32.gmra.mrb[14].mxu0 %vm225_vm1, %v5744_v35  ;;  %v6024_v35 = vld [vmem:[#allocation2 + $0xe0] sm:$0xff] }
  0x4f   : > { %4677 = vmatprep.mubr.msk.f32.mxu1 %vm225_vm1, %v5746_v36  ;;  %4900 = vmatprep.mubr.msk.f32.mxu0 %vm225_vm1, %v5748_v37  ;;  %v6012_v36 = vld [vmem:[#allocation2 + $0x18a] sm:$0xff] }
  0x50   : > { %6631 = vst [vmem:[#allocation33_spill] sm:$0xff] %v6012_v36 }
  0x52   : > { %4678 = vmatmul.mubr.msk.f32.gmra.mrb[18].mxu1 %vm225_vm1, %v5758_v38  ;;  %4901 = vmatmul.mubr.msk.f32.vlgmr.msra.gmra.mrb[0].mxu0 %vm225_vm1, %v5760_v39  ;;  %v6000_v38 = vld [vmem:[#allocation2 + $0x182] sm:$0xff] }
  0x53   : > { %4949 = vmatpush3.msk.msra.mxu0 %vm619_vm0, %v5605_v30  ;;  %4680 = vmatprep.mubr.msk.f32.mxu1 %vm225_vm1, %v5762_v41  ;;  %v5799_v30 = vld [vmem:[#allocation2 + $0x111] sm:$0xff]  ;;  %v5998_v41 = vld [vmem:[#allocation2 + $0xc0] sm:$0xff]  ;;  %6630 = vst [vmem:[#allocation32_spill] sm:$0xff] %v6000_v38 }
  0x54   : > { %4903 = vmatprep.mubr.msk.f32.mxu0 %vm225_vm1, %v5764_v42  ;;  %4998 = vmatprep.subr.msk.mxu0 %vm619_vm0, %v5769_v43  ;;  %6607 = vst [vmem:[#allocation9_spill] sm:$0xff] %v5799_v30 }
  0x56   : > { %4681 = vmatmul.mubr.msk.f32.gmra.mrb[20].mxu1 %vm225_vm1, %v5779_v44  ;;  %4904 = vmatmul.mubr.msk.f32.gmra.mrb[2].mxu0 %vm225_vm1, %v5781_v45  ;;  %v5996_v44 = vld [vmem:[#allocation2 + $0x172] sm:$0xff] }
  0x57   : > { %4683 = vmatprep.mubr.msk.f32.mxu1 %vm225_vm1, %v5785_v4  ;;  %4906 = vmatprep.mubr.msk.f32.mxu0 %vm225_vm1, %v5787_v47  ;;  %v5994_v4 = vld [vmem:[#allocation2 + $0xb0] sm:$0xff]  ;;  %6629 = vst [vmem:[#allocation31_spill] sm:$0xff] %v5996_v44 }
  0x58   : > { %6628 = vst [vmem:[#allocation30_spill] sm:$0xff] %v5994_v4 }
  0x5a   : > { %4684 = vmatmul.mubr.msk.f32.gmra.mrb[22].mxu1 %vm225_vm1, %v5799_v30  ;;  %4907 = vmatmul.mubr.msk.f32.gmra.mrb[4].mxu0 %vm225_vm1, %v5801_v48  ;;  %v5984_v30 = vld [vmem:[#allocation2 + $0x16a] sm:$0xff] }
  0x5b   : > { %4686 = vmatprep.mubr.msk.f32.mxu1 %vm225_vm1, %v5803_v49  ;;  %4909 = vmatprep.mubr.msk.f32.mxu0 %vm225_vm1, %v5805_v50  ;;  %v5982_v49 = vld [vmem:[#allocation2 + $0xa8] sm:$0xff] }
  0x5e   : > { %4687 = vmatmul.mubr.msk.f32.gmra.mrb[24].mxu1 %vm225_vm1, %v5815_v51  ;;  %4910 = vmatmul.mubr.msk.f32.gmra.mrb[6].mxu0 %vm225_vm1, %v5817_v52  ;;  %v5980_v51 = vld [vmem:[#allocation2 + $0x15a] sm:$0xff] }
  0x5f   : > { %4689 = vmatprep.mubr.msk.f32.mxu1 %vm225_vm1, %v5819_v53  ;;  %4912 = vmatprep.mubr.msk.f32.mxu0 %vm225_vm1, %v5821_v54  ;;  %v5978_v53 = vld [vmem:[#allocation2 + $0x98] sm:$0xff] }
  0x60   : > { %6627 = vst [vmem:[#allocation29_spill] sm:$0xff] %v5978_v53 }
  0x62   : > { %4690 = vmatmul.mubr.msk.f32.gmra.mrb[26].mxu1 %vm225_vm1, %v5831_v55  ;;  %4913 = vmatmul.mubr.msk.f32.gmra.mrb[8].mxu0 %vm225_vm1, %v5833_v56  ;;  %v5968_v55 = vld [vmem:[#allocation2 + $0x152] sm:$0xff] }
  0x63   : > { %4692 = vmatprep.mubr.msk.f32.mxu1 %vm225_vm1, %v5835_v57  ;;  %4915 = vmatprep.mubr.msk.f32.mxu0 %vm225_vm1, %v5837_v58  ;;  %v5966_v57 = vld [vmem:[#allocation2 + $0x90] sm:$0xff] }
  0x64   : > { %6626 = vst [vmem:[#allocation28_spill] sm:$0xff] %v5966_v57 }
  0x66   : > { %4693 = vmatmul.mubr.msk.f32.gmra.mrb[28].mxu1 %vm225_vm1, %v5847_v59  ;;  %4916 = vmatmul.mubr.msk.f32.gmra.mrb[10].mxu0 %vm225_vm1, %v5849_v60  ;;  %v5964_v59 = vld [vmem:[#allocation2 + $0x142] sm:$0xff] }
  0x67   : > { %4695 = vmatprep.mubr.msk.f32.mxu1 %vm225_vm1, %v5851_v62  ;;  %4918 = vmatprep.mubr.msk.f32.mxu0 %vm225_vm1, %v5853_v63  ;;  %v5962_v62 = vld [vmem:[#allocation2 + $0x80] sm:$0xff] }
  0x68   : > { %6625 = vst [vmem:[#allocation27_spill] sm:$0xff] %v5962_v62 }
  0x6a   : > { %4696 = vmatmul.mubr.msk.f32.gmra.mrb[30].mxu1 %vm225_vm1, %v5863_v0  ;;  %4919 = vmatmul.mubr.msk.f32.gmra.mrb[12].mxu0 %vm225_vm1, %v5865_v1  ;;  %v5952_v0 = vld [vmem:[#allocation2 + $0x13a] sm:$0xff] }
  0x6b   : > { %4700 = vmatprep.mubr.msk.f32.mxu1 %vm225_vm1, %v456_v3  ;;  %4921 = vmatprep.mubr.msk.f32.mxu0 %vm225_vm1, %v5867_v8  ;;  %v5948_v3 = vld [vmem:[#allocation2 + $0x12a] sm:$0xff] }
  0x6e   : > { %4701 = vmatmul.mubr.msk.f32.vlgmr.msra.gmra.mrb[0].mxu1 %vm225_vm1, %v457_v9  ;;  %4922 = vmatmul.mubr.msk.f32.gmra.mrb[14].mxu0 %vm225_vm1, %v5876_v11  ;;  %v5950_v9 = vld [vmem:[#allocation2 + $0x78] sm:$0xff] }
  0x6f   : > { %4703 = vmatprep.mubr.msk.f32.mxu1 %vm225_vm1, %v5878_v12  ;;  %4924 = vmatprep.mubr.msk.f32.mxu0 %vm225_vm1, %v5880_v13  ;;  %6624 = vst [vmem:[#allocation26_spill] sm:$0xff] %v5950_v9  ;;  %v6014_v12 = vld [vmem:[#allocation2 + $0xd8] sm:$0xff] }
  0x70   : > { %4749 = vmatpush3.msk.msra.mxu1 %vm619_vm0, %v5521_v10  ;;  %v5914_v10 = vld [vmem:[#allocation2 + $0x38] sm:$0xff] }
  0x71   : > { %4798 = vmatprep.subr.msk.mxu1 %vm619_vm0, %v5888_v14  ;;  %6619 = vst [vmem:[#allocation21_spill] sm:$0xff] %v5914_v10 }
  0x72   : > { %4704 = vmatmul.mubr.msk.f32.gmra.mrb[2].mxu1 %vm225_vm1, %v5894_v15  ;;  %4925 = vmatmul.mubr.msk.f32.gmra.mrb[16].mxu0 %vm225_vm1, %v5896_v16  ;;  %v6010_v15 = vld [vmem:[#allocation2 + $0xc8] sm:$0xff] }
  0x73   : > { %4706 = vmatprep.mubr.msk.f32.mxu1 %vm225_vm1, %v5900_v17  ;;  %4927 = vmatprep.mubr.msk.f32.mxu0 %vm225_vm1, %v5902_v18 }
  0x76   : > { %4707 = vmatmul.mubr.msk.f32.gmra.mrb[4].mxu1 %vm225_vm1, %v5914_v10  ;;  %4928 = vmatmul.mubr.msk.f32.gmra.mrb[18].mxu0 %vm225_vm1, %v5916_v19 }
  0x77   : > { %4709 = vmatprep.mubr.msk.f32.mxu1 %vm225_vm1, %v5918_v20  ;;  %4930 = vmatprep.mubr.msk.f32.mxu0 %vm225_vm1, %v5920_v22 }
  0x7a   : > { %4710 = vmatmul.mubr.msk.f32.gmra.mrb[6].mxu1 %vm225_vm1, %v5930_v5  ;;  %4931 = vmatmul.mubr.msk.f32.gmra.mrb[20].mxu0 %vm225_vm1, %v5932_v25 }
  0x7b   : > { %4712 = vmatprep.mubr.msk.f32.mxu1 %vm225_vm1, %v5934_v26  ;;  %4933 = vmatprep.mubr.msk.f32.mxu0 %vm225_vm1, %v5936_v27 }
  0x7e   : > { %4713 = vmatmul.mubr.msk.f32.gmra.mrb[8].mxu1 %vm225_vm1, %v5946_v28  ;;  %4934 = vmatmul.mubr.msk.f32.gmra.mrb[22].mxu0 %vm225_vm1, %v5948_v3 }
  0x7f   : > { %4715 = vmatprep.mubr.msk.f32.mxu1 %vm225_vm1, %v5950_v9  ;;  %4936 = vmatprep.mubr.msk.f32.mxu0 %vm225_vm1, %v5952_v0 }
  0x82   : > { %4716 = vmatmul.mubr.msk.f32.gmra.mrb[10].mxu1 %vm225_vm1, %v5962_v62  ;;  %4937 = vmatmul.mubr.msk.f32.gmra.mrb[24].mxu0 %vm225_vm1, %v5964_v59 }
  0x83   : > { %4718 = vmatprep.mubr.msk.f32.mxu1 %vm225_vm1, %v5966_v57  ;;  %4939 = vmatprep.mubr.msk.f32.mxu0 %vm225_vm1, %v5968_v55 }
  0x86   : > { %4719 = vmatmul.mubr.msk.f32.gmra.mrb[12].mxu1 %vm225_vm1, %v5978_v53  ;;  %4940 = vmatmul.mubr.msk.f32.gmra.mrb[26].mxu0 %vm225_vm1, %v5980_v51 }
  0x87   : > { %4721 = vmatprep.mubr.msk.f32.mxu1 %vm225_vm1, %v5982_v49  ;;  %4942 = vmatprep.mubr.msk.f32.mxu0 %vm225_vm1, %v5984_v30 }
  0x8a   : > { %4722 = vmatmul.mubr.msk.f32.gmra.mrb[14].mxu1 %vm225_vm1, %v5994_v4  ;;  %4943 = vmatmul.mubr.msk.f32.gmra.mrb[28].mxu0 %vm225_vm1, %v5996_v44  ;;  %v6031_v44 = vld [vmem:[%s6556_s3 + $0x20] sm:$0xf] }
  0x8b   : > { %4724 = vmatprep.mubr.msk.f32.mxu1 %vm225_vm1, %v5998_v41  ;;  %4945 = vmatprep.mubr.msk.f32.mxu0 %vm225_vm1, %v6000_v38  ;;  %v6026_v38 = vld [vmem:[#allocation2 + $0xf0] sm:$0xff] }
  0x8e   : > { %4725 = vmatmul.mubr.msk.f32.gmra.mrb[16].mxu1 %vm225_vm1, %v6010_v15  ;;  %4946 = vmatmul.mubr.msk.f32.gmra.mrb[30].mxu0 %vm225_vm1, %v6012_v36  ;;  %v6041_v36 = vld [vmem:[#allocation2 + $0xf8] sm:$0xff] }
  0x8f   : > { %4727 = vmatprep.mubr.msk.f32.mxu1 %vm225_vm1, %v6014_v12  ;;  %4950 = vmatprep.mubr.msk.f32.mxu0 %vm225_vm1, %v5900_v17  ;;  %v6045_v17 = vld [vmem:[#allocation2 + $0x108] sm:$0xff] }
  0x92   : > { %4728 = vmatmul.mubr.msk.f32.gmra.mrb[18].mxu1 %vm225_vm1, %v6024_v35  ;;  %4951 = vmatmul.mubr.msk.f32.vlgmr.msra.gmra.mrb[0].mxu0 %vm225_vm1, %v5914_v10  ;;  %v6071_v10 = vld [vmem:[#allocation2 + $0x138] sm:$0xff] }
  0x93   : > { %4999 = vmatpush3.msk.msra.mxu0 %vm619_vm0, %v5769_v43  ;;  %4730 = vmatprep.mubr.msk.f32.mxu1 %vm225_vm1, %v6026_v38  ;;  %v6057_v43 = vld [vmem:[#allocation2 + $0x110] sm:$0xff] }
  0x94   : > { %4953 = vmatprep.mubr.msk.f32.mxu0 %vm225_vm1, %v5918_v20  ;;  %5048 = vmatprep.subr.msk.mxu0 %vm619_vm0, %v6031_v44  ;;  %v6059_v20 = vld [vmem:[#allocation2 + $0x120] sm:$0xff] }
  0x96   : > { %4731 = vmatmul.mubr.msk.f32.gmra.mrb[20].mxu1 %vm225_vm1, %v6041_v36  ;;  %4954 = vmatmul.mubr.msk.f32.gmra.mrb[2].mxu0 %vm225_vm1, %v5930_v5  ;;  %v6069_v5 = vld [vmem:[#allocation2 + $0x128] sm:$0xff] }
  0x97   : > { %4733 = vmatprep.mubr.msk.f32.mxu1 %vm225_vm1, %v6045_v17  ;;  %4956 = vmatprep.mubr.msk.f32.mxu0 %vm225_vm1, %v5934_v26  ;;  %v6083_v26 = vld [vmem:[#allocation2 + $0x150] sm:$0xff] }
  0x9a   : > { %4734 = vmatmul.mubr.msk.f32.gmra.mrb[22].mxu1 %vm225_vm1, %v6057_v43  ;;  %4957 = vmatmul.mubr.msk.f32.gmra.mrb[4].mxu0 %vm225_vm1, %v5946_v28  ;;  %v6081_v28 = vld [vmem:[#allocation2 + $0x140] sm:$0xff] }
  0x9b   : > { %4736 = vmatprep.mubr.msk.f32.mxu1 %vm225_vm1, %v6059_v20  ;;  %4959 = vmatprep.mubr.msk.f32.mxu0 %vm225_vm1, %v5950_v9  ;;  %v6095_v9 = vld [vmem:[#allocation2 + $0x168] sm:$0xff] }
  0x9e   : > { %4737 = vmatmul.mubr.msk.f32.gmra.mrb[24].mxu1 %vm225_vm1, %v6069_v5  ;;  %4960 = vmatmul.mubr.msk.f32.gmra.mrb[6].mxu0 %vm225_vm1, %v5962_v62  ;;  %v6093_v62 = vld [vmem:[#allocation2 + $0x158] sm:$0xff] }
  0x9f   : > { %4739 = vmatprep.mubr.msk.f32.mxu1 %vm225_vm1, %v6071_v10  ;;  %4962 = vmatprep.mubr.msk.f32.mxu0 %vm225_vm1, %v5966_v57  ;;  %v1172_v57 = vld [vmem:[#allocation2 + $0x2] sm:$0xff] }
  0xa2   : > { %4740 = vmatmul.mubr.msk.f32.gmra.mrb[26].mxu1 %vm225_vm1, %v6081_v28  ;;  %4963 = vmatmul.mubr.msk.f32.gmra.mrb[8].mxu0 %vm225_vm1, %v5978_v53  ;;  %v6105_v53 = vld [vmem:[#allocation2 + $0x170] sm:$0xff] }
  0xa3   : > { %4742 = vmatprep.mubr.msk.f32.mxu1 %vm225_vm1, %v6083_v26  ;;  %4965 = vmatprep.mubr.msk.f32.mxu0 %vm225_vm1, %v5982_v49 }
  0xa6   : > { %4743 = vmatmul.mubr.msk.f32.gmra.mrb[28].mxu1 %vm225_vm1, %v6093_v62  ;;  %4966 = vmatmul.mubr.msk.f32.gmra.mrb[10].mxu0 %vm225_vm1, %v5994_v4  ;;  %v1173_v4 = vld [vmem:[#allocation2 + $0xa] sm:$0xff] }
  0xa7   : > { %4745 = vmatprep.mubr.msk.f32.mxu1 %vm225_vm1, %v6095_v9  ;;  %4968 = vmatprep.mubr.msk.f32.mxu0 %vm225_vm1, %v5998_v41 }
  0xaa   : > { %4746 = vmatmul.mubr.msk.f32.gmra.mrb[30].mxu1 %vm225_vm1, %v6105_v53  ;;  %4969 = vmatmul.mubr.msk.f32.gmra.mrb[12].mxu0 %vm225_vm1, %v6010_v15 }
  0xab   : > { %4750 = vmatprep.mubr.msk.f32.mxu1 %vm225_vm1, %v1172_v57  ;;  %4971 = vmatprep.mubr.msk.f32.mxu0 %vm225_vm1, %v6014_v12  ;;  %v2764_v57 = vld [vmem:[#allocation2 + $0x1a0] sm:$0xff] }
  0xae   : > { %4751 = vmatmul.mubr.msk.f32.vlgmr.msra.gmra.mrb[0].mxu1 %vm225_vm1, %v1173_v4  ;;  %4972 = vmatmul.mubr.msk.f32.gmra.mrb[14].mxu0 %vm225_vm1, %v6024_v35  ;;  %v2763_v4 = vld [vmem:[#allocation2 + $0x198] sm:$0xff] }
  0xaf   : > { %4753 = vmatprep.mubr.msk.f32.mxu1 %vm225_vm1, %v5748_v37  ;;  %4974 = vmatprep.mubr.msk.f32.mxu0 %vm225_vm1, %v6026_v38  ;;  %v6165_v37 = vld [vmem:[#allocation2 + $0x180] sm:$0xff] }
  0xb0   : > { %4799 = vmatpush3.msk.msra.mxu1 %vm619_vm0, %v5888_v14  ;;  %v6646_v14 = vld [vmem:[#allocation24_spill] sm:$0xff] }
  0xb1   : > { %5098 = vmatprep.subr.msk.mxu1 %vm619_vm0, %v5473_v2 }
  0xb2   : > { %4754 = vmatmul.mubr.msk.f32.gmra.mrb[2].mxu1 %vm225_vm1, %v5760_v39  ;;  %4975 = vmatmul.mubr.msk.f32.gmra.mrb[16].mxu0 %vm225_vm1, %v6041_v36  ;;  %v6175_v39 = vld [vmem:[#allocation2 + $0x188] sm:$0xff] }
  0xb3   : > { %4756 = vmatprep.mubr.msk.f32.mxu1 %vm225_vm1, %v5764_v42  ;;  %4977 = vmatprep.mubr.msk.f32.mxu0 %vm225_vm1, %v6045_v17 }
  0xb6   : > { %4757 = vmatmul.mubr.msk.f32.gmra.mrb[4].mxu1 %vm225_vm1, %v5781_v45  ;;  %4978 = vmatmul.mubr.msk.f32.gmra.mrb[18].mxu0 %vm225_vm1, %v6057_v43 }
  0xb7   : > { %4759 = vmatprep.mubr.msk.f32.mxu1 %vm225_vm1, %v5787_v47  ;;  %4980 = vmatprep.mubr.msk.f32.mxu0 %vm225_vm1, %v6059_v20 }
  0xba   : > { %4760 = vmatmul.mubr.msk.f32.gmra.mrb[6].mxu1 %vm225_vm1, %v5801_v48  ;;  %4981 = vmatmul.mubr.msk.f32.gmra.mrb[20].mxu0 %vm225_vm1, %v6069_v5 }
  0xbb   : > { %4762 = vmatprep.mubr.msk.f32.mxu1 %vm225_vm1, %v5805_v50  ;;  %4983 = vmatprep.mubr.msk.f32.mxu0 %vm225_vm1, %v6071_v10 }
  0xbe   : > { %4763 = vmatmul.mubr.msk.f32.gmra.mrb[8].mxu1 %vm225_vm1, %v5817_v52  ;;  %4984 = vmatmul.mubr.msk.f32.gmra.mrb[22].mxu0 %vm225_vm1, %v6081_v28 }
  0xbf   : > { %4765 = vmatprep.mubr.msk.f32.mxu1 %vm225_vm1, %v5821_v54  ;;  %4986 = vmatprep.mubr.msk.f32.mxu0 %vm225_vm1, %v6083_v26 }
  0xc2   : > { %4766 = vmatmul.mubr.msk.f32.gmra.mrb[10].mxu1 %vm225_vm1, %v5833_v56  ;;  %4987 = vmatmul.mubr.msk.f32.gmra.mrb[24].mxu0 %vm225_vm1, %v6093_v62 }
  0xc3   : > { %4768 = vmatprep.mubr.msk.f32.mxu1 %vm225_vm1, %v5837_v58  ;;  %4989 = vmatprep.mubr.msk.f32.mxu0 %vm225_vm1, %v6095_v9 }
  0xc6   : > { %4769 = vmatmul.mubr.msk.f32.gmra.mrb[12].mxu1 %vm225_vm1, %v5849_v60  ;;  %4990 = vmatmul.mubr.msk.f32.gmra.mrb[26].mxu0 %vm225_vm1, %v6105_v53 }
  0xc7   : > { %4771 = vmatprep.mubr.msk.f32.mxu1 %vm225_vm1, %v5853_v63  ;;  %4992 = vmatprep.mubr.msk.f32.mxu0 %vm225_vm1, %v6165_v37 }
  0xca   : > { %4772 = vmatmul.mubr.msk.f32.gmra.mrb[14].mxu1 %vm225_vm1, %v5865_v1  ;;  %4993 = vmatmul.mubr.msk.f32.gmra.mrb[28].mxu0 %vm225_vm1, %v6175_v39 }
  0xcb   : > { %4774 = vmatprep.mubr.msk.f32.mxu1 %vm225_vm1, %v5867_v8  ;;  %4995 = vmatprep.mubr.msk.f32.mxu0 %vm225_vm1, %v2763_v4  ;;  %v6648_v4 = vld [vmem:[#allocation25_spill] sm:$0xff] }
  0xce   : > { %4775 = vmatmul.mubr.msk.f32.gmra.mrb[16].mxu1 %vm225_vm1, %v5876_v11  ;;  %4996 = vmatmul.mubr.msk.f32.gmra.mrb[30].mxu0 %vm225_vm1, %v2764_v57  ;;  %v6649_v57 = vld [vmem:[#allocation11_spill] sm:$0xff] }
  0xcf   : > { %4777 = vmatprep.mubr.msk.f32.mxu1 %vm225_vm1, %v5880_v13  ;;  %5000 = vmatprep.mubr.msk.f32.mxu0 %vm225_vm1, %v5594_v24  ;;  %v6632_v24 = vld [vmem:[#allocation31_spill] sm:$0xff] }
  0xd2   : > { %4778 = vmatmul.mubr.msk.f32.gmra.mrb[18].mxu1 %vm225_vm1, %v5896_v16  ;;  %5001 = vmatmul.mubr.msk.f32.vlgmr.msra.gmra.mrb[0].mxu0 %vm225_vm1, %v5625_v40  ;;  %v6633_v40 = vld [vmem:[#allocation3_spill] sm:$0xff] }
  0xd3   : > { %5049 = vmatpush3.msk.msra.mxu0 %vm619_vm0, %v6031_v44  ;;  %4780 = vmatprep.mubr.msk.f32.mxu1 %vm225_vm1, %v5902_v18  ;;  %v6645_v44 = vld [vmem:[#allocation9_spill] sm:$0xff] }
  0xd4   : > { %5003 = vmatprep.mubr.msk.f32.mxu0 %vm225_vm1, %v5631_v46  ;;  %v6634_v46 = vld [vmem:[#allocation18_spill] sm:$0xff] }
  0xd6   : > { %4781 = vmatmul.mubr.msk.f32.gmra.mrb[20].mxu1 %vm225_vm1, %v5916_v19  ;;  %5004 = vmatmul.mubr.msk.f32.gmra.mrb[2].mxu0 %vm225_vm1, %v5659_v61  ;;  %v6635_v61 = vld [vmem:[#allocation4_spill] sm:$0xff] }
  0xd7   : > { %4783 = vmatprep.mubr.msk.f32.mxu1 %vm225_vm1, %v5920_v22  ;;  %5006 = vmatprep.mubr.msk.f32.mxu0 %vm225_vm1, %v5665_v7  ;;  %v6636_v7 = vld [vmem:[#allocation19_spill] sm:$0xff] }
  0xda   : > { %4784 = vmatmul.mubr.msk.f32.gmra.mrb[22].mxu1 %vm225_vm1, %v5932_v25  ;;  %5007 = vmatmul.mubr.msk.f32.gmra.mrb[4].mxu0 %vm225_vm1, %v5686_v21  ;;  %v6637_v21 = vld [vmem:[#allocation5_spill] sm:$0xff] }
  0xdb   : > { %4786 = vmatprep.mubr.msk.f32.mxu1 %vm225_vm1, %v5936_v27  ;;  %5009 = vmatprep.mubr.msk.f32.mxu0 %vm225_vm1, %v5692_v23  ;;  %v6638_v23 = vld [vmem:[#allocation20_spill] sm:$0xff] }
  0xde   : > { %4787 = vmatmul.mubr.msk.f32.gmra.mrb[24].mxu1 %vm225_vm1, %v5948_v3  ;;  %5010 = vmatmul.mubr.msk.f32.gmra.mrb[6].mxu0 %vm225_vm1, %v5706_v29  ;;  %v6639_v29 = vld [vmem:[#allocation6_spill] sm:$0xff] }
  0xdf   : > { %4789 = vmatprep.mubr.msk.f32.mxu1 %vm225_vm1, %v5952_v0  ;;  %5012 = vmatprep.mubr.msk.f32.mxu0 %vm225_vm1, %v5709_v6  ;;  %v6640_v6 = vld [vmem:[#allocation21_spill] sm:$0xff] }
  0xe2   : > { %4790 = vmatmul.mubr.msk.f32.gmra.mrb[26].mxu1 %vm225_vm1, %v5964_v59  ;;  %5013 = vmatmul.mubr.msk.f32.gmra.mrb[8].mxu0 %vm225_vm1, %v5720_v31  ;;  %v6641_v31 = vld [vmem:[#allocation7_spill] sm:$0xff] }
  0xe3   : > { %4792 = vmatprep.mubr.msk.f32.mxu1 %vm225_vm1, %v5968_v55  ;;  %5015 = vmatprep.mubr.msk.f32.mxu0 %vm225_vm1, %v5722_v32  ;;  %v6642_v32 = vld [vmem:[#allocation22_spill] sm:$0xff] }
  0xe6   : > { %4793 = vmatmul.mubr.msk.f32.gmra.mrb[28].mxu1 %vm225_vm1, %v5980_v51  ;;  %5016 = vmatmul.mubr.msk.f32.gmra.mrb[10].mxu0 %vm225_vm1, %v5732_v33  ;;  %v6643_v33 = vld [vmem:[#allocation8_spill] sm:$0xff] }
  0xe7   : > { %4795 = vmatprep.mubr.msk.f32.mxu1 %vm225_vm1, %v5984_v30  ;;  %5018 = vmatprep.mubr.msk.f32.mxu0 %vm225_vm1, %v5734_v34  ;;  %v6644_v34 = vld [vmem:[#allocation23_spill] sm:$0xff] }
  0xea   : > { %4796 = vmatmul.mubr.msk.f32.gmra.mrb[30].mxu1 %vm225_vm1, %v6632_v24  ;;  %5019 = vmatmul.mubr.msk.f32.gmra.mrb[12].mxu0 %vm225_vm1, %v6633_v40  ;;  %v6650_v40 = vld [vmem:[#allocation26_spill] sm:$0xff] }
  0xeb   : > { %4800 = vmatprep.mubr.msk.f32.mxu1 %vm225_vm1, %v6634_v46  ;;  %5021 = vmatprep.mubr.msk.f32.mxu0 %vm225_vm1, %v6635_v61  ;;  %v6651_v46 = vld [vmem:[#allocation12_spill] sm:$0xff]  ;;  %v6652_v61 = vld [vmem:[#allocation27_spill] sm:$0xff] }
  0xee   : > { %4801 = vmatmul.mubr.msk.f32.vlgmr.msra.gmra.mrb[0].mxu1 %vm225_vm1, %v6636_v7  ;;  %5022 = vmatmul.mubr.msk.f32.gmra.mrb[14].mxu0 %vm225_vm1, %v6637_v21  ;;  %v6653_v7 = vld [vmem:[#allocation13_spill] sm:$0xff]  ;;  %v6654_v21 = vld [vmem:[#allocation28_spill] sm:$0xff] }
  0xef   : > { %4803 = vmatprep.mubr.msk.f32.mxu1 %vm225_vm1, %v6638_v23  ;;  %5024 = vmatprep.mubr.msk.f32.mxu0 %vm225_vm1, %v6639_v29  ;;  %v6655_v23 = vld [vmem:[#allocation14_spill] sm:$0xff]  ;;  %v6656_v29 = vld [vmem:[#allocation29_spill] sm:$0xff] }
  0xf0   : > { %5099 = vmatpush3.msk.msra.mxu1 %vm619_vm0, %v5473_v2  ;;  %v6647_v2 = vld [vmem:[#allocation10_spill] sm:$0xff] }
  0xf2   : > { %4804 = vmatmul.mubr.msk.f32.gmra.mrb[2].mxu1 %vm225_vm1, %v6640_v6  ;;  %5025 = vmatmul.mubr.msk.f32.gmra.mrb[16].mxu0 %vm225_vm1, %v6641_v31  ;;  %v6657_v6 = vld [vmem:[#allocation15_spill] sm:$0xff]  ;;  %v6658_v31 = vld [vmem:[#allocation16_spill] sm:$0xff] }
  0xf3   : > { %4806 = vmatprep.mubr.msk.f32.mxu1 %vm225_vm1, %v6642_v32  ;;  %5027 = vmatprep.mubr.msk.f32.mxu0 %vm225_vm1, %v6643_v33  ;;  %v6299_v32 = vld [vmem:[#allocation2 + $0x181] sm:$0xff] }
  0xf6   : > { %4807 = vmatmul.mubr.msk.f32.gmra.mrb[4].mxu1 %vm225_vm1, %v6644_v34  ;;  %5028 = vmatmul.mubr.msk.f32.gmra.mrb[18].mxu0 %vm225_vm1, %v6645_v44  ;;  %v6659_v34 = vld [vmem:[#allocation30_spill] sm:$0xff] }
  0xf7   : > { %4809 = vmatprep.mubr.msk.f32.mxu1 %vm225_vm1, %v6646_v14  ;;  %5030 = vmatprep.mubr.msk.f32.mxu0 %vm225_vm1, %v6647_v2  ;;  %v6660_v14 = vld [vmem:[#allocation17_spill] sm:$0xff] }
  0xfa   : > { %4810 = vmatmul.mubr.msk.f32.gmra.mrb[6].mxu1 %vm225_vm1, %v6648_v4  ;;  %5031 = vmatmul.mubr.msk.f32.gmra.mrb[20].mxu0 %vm225_vm1, %v6649_v57  ;;  %v6309_v4 = vld [vmem:[#allocation2 + $0x189] sm:$0xff] }
  0xfb   : > { %4812 = vmatprep.mubr.msk.f32.mxu1 %vm225_vm1, %v6650_v40  ;;  %5033 = vmatprep.mubr.msk.f32.mxu0 %vm225_vm1, %v6651_v46  ;;  %v3154_v40 = vld [vmem:[#allocation2 + $0x1a1] sm:$0xff] }
  0xfe   : > { %4813 = vmatmul.mubr.msk.f32.gmra.mrb[8].mxu1 %vm225_vm1, %v6652_v61  ;;  %5034 = vmatmul.mubr.msk.f32.gmra.mrb[22].mxu0 %vm225_vm1, %v6653_v7 }
  0xff   : > { %4815 = vmatprep.mubr.msk.f32.mxu1 %vm225_vm1, %v6654_v21  ;;  %5036 = vmatprep.mubr.msk.f32.mxu0 %vm225_vm1, %v6655_v23 }
 0x102   : > { %4816 = vmatmul.mubr.msk.f32.gmra.mrb[10].mxu1 %vm225_vm1, %v6656_v29  ;;  %5037 = vmatmul.mubr.msk.f32.gmra.mrb[24].mxu0 %vm225_vm1, %v6657_v6 }
 0x103   : > { %4818 = vmatprep.mubr.msk.f32.mxu1 %vm225_vm1, %v5982_v49  ;;  %5039 = vmatprep.mubr.msk.f32.mxu0 %vm225_vm1, %v6658_v31  ;;  %v3153_v49 = vld [vmem:[#allocation2 + $0x199] sm:$0xff] }
 0x106   : > { %4819 = vmatmul.mubr.msk.f32.gmra.mrb[12].mxu1 %vm225_vm1, %v6659_v34  ;;  %5040 = vmatmul.mubr.msk.f32.gmra.mrb[26].mxu0 %vm225_vm1, %v6660_v14 }
 0x107   : > { %4821 = vmatprep.mubr.msk.f32.mxu1 %vm225_vm1, %v5998_v41  ;;  %5042 = vmatprep.mubr.msk.f32.mxu0 %vm225_vm1, %v6299_v32  ;;  %v1971_v41 = vld [vmem:[#allocation2 + $0xf9] sm:$0xff] }
 0x10a   : > { %4822 = vmatmul.mubr.msk.f32.gmra.mrb[14].mxu1 %vm225_vm1, %v6010_v15  ;;  %5043 = vmatmul.mubr.msk.f32.gmra.mrb[28].mxu0 %vm225_vm1, %v6309_v4 }
 0x10b   : > { %4824 = vmatprep.mubr.msk.f32.mxu1 %vm225_vm1, %v6014_v12  ;;  %5045 = vmatprep.mubr.msk.f32.mxu0 %vm225_vm1, %v3153_v49  ;;  %v6444_v12 = vld [vmem:[%s6557_s4] ss:$0 sm:$0xff] }
 0x10e   : > { %4825 = vmatmul.mubr.msk.f32.gmra.mrb[16].mxu1 %vm225_vm1, %v6024_v35  ;;  %5046 = vmatmul.mubr.msk.f32.gmra.mrb[30].mxu0 %vm225_vm1, %v3154_v40  ;;  %v1968_v35 = vld [vmem:[#allocation2 + $0xd9] sm:$0xff] }
 0x10f   : > { %4827 = vmatprep.mubr.msk.f32.mxu1 %vm225_vm1, %v6026_v38  ;;  %5050 = vmatprep.mubr.msk.f32.mxu0 %vm225_vm1, %v5764_v42  ;;  %v1970_v38 = vld [vmem:[#allocation2 + $0xf1] sm:$0xff] }
 0x110   : > { %v6661_v42 = vld [vmem:[#allocation32_spill] sm:$0xff] }
 0x112   : > { %4828 = vmatmul.mubr.msk.f32.gmra.mrb[18].mxu1 %vm225_vm1, %v6041_v36  ;;  %5051 = vmatmul.mubr.msk.f32.vlgmr.msra.gmra.mrb[0].mxu0 %vm225_vm1, %v5781_v45  ;;  %v1969_v36 = vld [vmem:[#allocation2 + $0xe1] sm:$0xff] }
 0x113   : > { %4830 = vmatprep.mubr.msk.f32.mxu1 %vm225_vm1, %v6045_v17  ;;  %5053 = vmatprep.mubr.msk.f32.mxu0 %vm225_vm1, %v5787_v47  ;;  %v3543_v45 = vld [vmem:[#allocation2 + $0x19a] sm:$0xff] }
 0x114   : > { %v6662_v47 = vld [vmem:[#allocation33_spill] sm:$0xff] }
 0x116   : > { %4831 = vmatmul.mubr.msk.f32.gmra.mrb[20].mxu1 %vm225_vm1, %v6057_v43  ;;  %5054 = vmatmul.mubr.msk.f32.gmra.mrb[2].mxu0 %vm225_vm1, %v5801_v48 }
 0x117   : > { %4833 = vmatprep.mubr.msk.f32.mxu1 %vm225_vm1, %v6059_v20  ;;  %5056 = vmatprep.mubr.msk.f32.mxu0 %vm225_vm1, %v5805_v50 }
 0x11a   : > { %4834 = vmatmul.mubr.msk.f32.gmra.mrb[22].mxu1 %vm225_vm1, %v6069_v5  ;;  %5057 = vmatmul.mubr.msk.f32.gmra.mrb[4].mxu0 %vm225_vm1, %v5817_v52 }
 0x11b   : > { %4836 = vmatprep.mubr.msk.f32.mxu1 %vm225_vm1, %v6071_v10  ;;  %5059 = vmatprep.mubr.msk.f32.mxu0 %vm225_vm1, %v5821_v54 }
 0x11e   : > { %4837 = vmatmul.mubr.msk.f32.gmra.mrb[24].mxu1 %vm225_vm1, %v6081_v28  ;;  %5060 = vmatmul.mubr.msk.f32.gmra.mrb[6].mxu0 %vm225_vm1, %v5833_v56 }
 0x11f   : > { %4839 = vmatprep.mubr.msk.f32.mxu1 %vm225_vm1, %v6083_v26  ;;  %5062 = vmatprep.mubr.msk.f32.mxu0 %vm225_vm1, %v5837_v58 }
 0x122   : > { %4840 = vmatmul.mubr.msk.f32.gmra.mrb[26].mxu1 %vm225_vm1, %v6093_v62  ;;  %5063 = vmatmul.mubr.msk.f32.gmra.mrb[8].mxu0 %vm225_vm1, %v5849_v60 }
 0x123   : > { %4842 = vmatprep.mubr.msk.f32.mxu1 %vm225_vm1, %v6095_v9  ;;  %5065 = vmatprep.mubr.msk.f32.mxu0 %vm225_vm1, %v5853_v63 }
 0x126   : > { %4843 = vmatmul.mubr.msk.f32.gmra.mrb[28].mxu1 %vm225_vm1, %v6105_v53  ;;  %5066 = vmatmul.mubr.msk.f32.gmra.mrb[10].mxu0 %vm225_vm1, %v5865_v1 }
 0x127   : > { %4845 = vmatprep.mubr.msk.f32.mxu1 %vm225_vm1, %v6165_v37  ;;  %5068 = vmatprep.mubr.msk.f32.mxu0 %vm225_vm1, %v5867_v8 }
 0x12a   : > { %4846 = vmatmul.mubr.msk.f32.gmra.mrb[30].mxu1 %vm225_vm1, %v6175_v39  ;;  %5069 = vmatmul.mubr.msk.f32.gmra.mrb[12].mxu0 %vm225_vm1, %v5876_v11 }
 0x12b   : > { %4874 = vmatprep.mubr.msk.f32.mxu1 %vm225_vm1, %v1968_v35  ;;  %5071 = vmatprep.mubr.msk.f32.mxu0 %vm225_vm1, %v5880_v13 }
 0x12e   : > { %4875 = vmatmul.mubr.msk.f32.vlgmr.msra.gmra.mrb[16].mxu1 %vm225_vm1, %v1969_v36  ;;  %5072 = vmatmul.mubr.msk.f32.gmra.mrb[14].mxu0 %vm225_vm1, %v5896_v16 }
 0x12f   : > { %4877 = vmatprep.mubr.msk.f32.mxu1 %vm225_vm1, %v1970_v38  ;;  %5074 = vmatprep.mubr.msk.f32.mxu0 %vm225_vm1, %v5902_v18 }
 0x132   : > { %4878 = vmatmul.mubr.msk.f32.gmra.mrb[18].mxu1 %vm225_vm1, %v1971_v41  ;;  %5075 = vmatmul.mubr.msk.f32.gmra.mrb[16].mxu0 %vm225_vm1, %v5916_v19 }
 0x133   : > { %4880 = vmatprep.mubr.msk.f32.mxu1 %vm225_vm1, %v6643_v33  ;;  %5077 = vmatprep.mubr.msk.f32.mxu0 %vm225_vm1, %v5920_v22 }
 0x136   : > { %4881 = vmatmul.mubr.msk.f32.gmra.mrb[20].mxu1 %vm225_vm1, %v6645_v44  ;;  %5078 = vmatmul.mubr.msk.f32.gmra.mrb[18].mxu0 %vm225_vm1, %v5932_v25 }
 0x137   : > { %4883 = vmatprep.mubr.msk.f32.mxu1 %vm225_vm1, %v6647_v2  ;;  %5080 = vmatprep.mubr.msk.f32.mxu0 %vm225_vm1, %v5936_v27 }
 0x13a   : > { %4884 = vmatmul.mubr.msk.f32.gmra.mrb[22].mxu1 %vm225_vm1, %v6649_v57  ;;  %5081 = vmatmul.mubr.msk.f32.gmra.mrb[20].mxu0 %vm225_vm1, %v5948_v3 }
 0x13b   : > { %4886 = vmatprep.mubr.msk.f32.mxu1 %vm225_vm1, %v6651_v46  ;;  %5083 = vmatprep.mubr.msk.f32.mxu0 %vm225_vm1, %v5952_v0 }
 0x13e   : > { %4887 = vmatmul.mubr.msk.f32.gmra.mrb[24].mxu1 %vm225_vm1, %v6653_v7  ;;  %5084 = vmatmul.mubr.msk.f32.gmra.mrb[22].mxu0 %vm225_vm1, %v5964_v59 }
 0x13f   : > { %4889 = vmatprep.mubr.msk.f32.mxu1 %vm225_vm1, %v6655_v23  ;;  %5086 = vmatprep.mubr.msk.f32.mxu0 %vm225_vm1, %v5968_v55 }
 0x142   : > { %4890 = vmatmul.mubr.msk.f32.gmra.mrb[26].mxu1 %vm225_vm1, %v6657_v6  ;;  %5087 = vmatmul.mubr.msk.f32.gmra.mrb[24].mxu0 %vm225_vm1, %v5980_v51 }
 0x143   : > { %4892 = vmatprep.mubr.msk.f32.mxu1 %vm225_vm1, %v6658_v31  ;;  %5089 = vmatprep.mubr.msk.f32.mxu0 %vm225_vm1, %v5984_v30  ;;  %v3544_v30 = vld [vmem:[#allocation2 + $0x1a2] sm:$0xff] }
 0x146   : > { %4893 = vmatmul.mubr.msk.f32.gmra.mrb[28].mxu1 %vm225_vm1, %v6660_v14  ;;  %5090 = vmatmul.mubr.msk.f32.gmra.mrb[26].mxu0 %vm225_vm1, %v6632_v24 }
 0x147   : > { %4895 = vmatprep.mubr.msk.f32.mxu1 %vm225_vm1, %v6299_v32  ;;  %5092 = vmatprep.mubr.msk.f32.mxu0 %vm225_vm1, %v6661_v42 }
 0x14a   : > { %4896 = vmatmul.mubr.msk.f32.gmra.mrb[30].mxu1 %vm225_vm1, %v6309_v4  ;;  %5093 = vmatmul.mubr.msk.f32.gmra.mrb[28].mxu0 %vm225_vm1, %v6662_v47 }
 0x14b   : > { %5095 = vmatprep.mubr.msk.f32.mxu0 %vm225_vm1, %v3543_v45 }
 0x14e   : > { %5096 = vmatmul.mubr.msk.f32.gmra.mrb[30].mxu0 %vm225_vm1, %v3544_v30 }
 0x1c1   : > { %v4802_v48 = vpop.f32.mrb[0].mxu1 }
 0x1c2   : > { %v1761_v50 = vpop.f32.mrb[1].mxu1 }
 0x1c5   : > { %v4805_v51 = vpop.f32.mrb[2].mxu1 }
 0x1c6   : > { %v1771_v52 = vpop.f32.mrb[3].mxu1 }
 0x1c9   : > { %v4808_v53 = vpop.f32.mrb[4].mxu1 }
 0x1ca   : > { %v1781_v54 = vpop.f32.mrb[5].mxu1 }
 0x1cd   : > { %v4811_v55 = vpop.f32.mrb[6].mxu1 }
 0x1ce   : > { %v1791_v56 = vpop.f32.mrb[7].mxu1 }
 0x1d1   : > { %v4814_v58 = vpop.f32.mrb[8].mxu1 }
 0x1d2   : > { %v1801_v59 = vpop.f32.mrb[9].mxu1 }
 0x1d5   : > { %v4817_v60 = vpop.f32.mrb[10].mxu1 }
 0x1d6   : > { %v1811_v62 = vpop.f32.mrb[11].mxu1 }
 0x1d9   : > { %v4820_v63 = vpop.f32.mrb[12].mxu1 }
 0x1da   : > { %v1821_v0 = vpop.f32.mrb[13].mxu1 }
 0x1dd   : > { %v4823_v1 = vpop.f32.mrb[14].mxu1 }
 0x1de   : > { %v6439_v8 = vpop.f32.mrb[15].mxu1 }
 0x1e5   : > { %v5052_v11 = vpop.f32.mrb[0].mxu0 }
 0x1e6   : > { %v5100_v13 = vadd.f32 %v5052_v11, %v4802_v48  ;;  %v3712_v15 = vpop.f32.mrb[1].mxu0 }
 0x1e7   : > { %v5101_v16 = vadd.f32 %v3712_v15, %v1761_v50 }
 0x1e8   : > { %v3911_v17 = vadd.f32 %v5100_v13, %v6444_v12 }
 0x1e9   : > { %v3910_v18 = vadd.f32 %v5101_v16, %v6444_v12  ;;  %v5055_v10 = vpop.f32.mrb[2].mxu0 }
 0x1ea   : > { %3944 = vst.msk [vmem:[%s6451_s27 + $0x8] sm:$0xff] %vm3942_vm3, %v3911_v17  ;;  %v5102_v19 = vadd.f32 %v5055_v10, %v4805_v51  ;;  %v3722_v20 = vpop.f32.mrb[3].mxu0 }
 0x1eb   : > { %3943 = vst.msk [vmem:[%s6451_s27] sm:$0xff] %vm3942_vm3, %v3910_v18  ;;  %v5103_v22 = vadd.f32 %v3722_v20, %v1771_v52 }
 0x1ec   : > { %v3913_v5 = vadd.f32 %v5102_v19, %v6444_v12 }
 0x1ed   : > { %v3912_v25 = vadd.f32 %v5103_v22, %v6444_v12  ;;  %v5058_v26 = vpop.f32.mrb[4].mxu0 }
 0x1ee   : > { %3946 = vst.msk [vmem:[%s6451_s27 + $0x18] sm:$0xff] %vm3942_vm3, %v3913_v5  ;;  %v5104_v27 = vadd.f32 %v5058_v26, %v4808_v53  ;;  %v3732_v28 = vpop.f32.mrb[5].mxu0 }
 0x1ef   : > { %3945 = vst.msk [vmem:[%s6451_s27 + $0x10] sm:$0xff] %vm3942_vm3, %v3912_v25  ;;  %v5105_v3 = vadd.f32 %v3732_v28, %v1781_v54 }
 0x1f0   : > { %v3915_v9 = vadd.f32 %v5104_v27, %v6444_v12 }
 0x1f1   : > { %v3914_v43 = vadd.f32 %v5105_v3, %v6444_v12  ;;  %v5061_v37 = vpop.f32.mrb[6].mxu0 }
 0x1f2   : > { %3948 = vst.msk [vmem:[%s6451_s27 + $0x28] sm:$0xff] %vm3942_vm3, %v3915_v9  ;;  %v5106_v39 = vadd.f32 %v5061_v37, %v4811_v55  ;;  %v3742_v24 = vpop.f32.mrb[7].mxu0 }
 0x1f3   : > { %3947 = vst.msk [vmem:[%s6451_s27 + $0x20] sm:$0xff] %vm3942_vm3, %v3914_v43  ;;  %v5107_v33 = vadd.f32 %v3742_v24, %v1791_v56 }
 0x1f4   : > { %v3917_v44 = vadd.f32 %v5106_v39, %v6444_v12 }
 0x1f5   : > { %v3916_v2 = vadd.f32 %v5107_v33, %v6444_v12  ;;  %v5064_v57 = vpop.f32.mrb[8].mxu0 }
 0x1f6   : > { %3950 = vst.msk [vmem:[%s6451_s27 + $0x38] sm:$0xff] %vm3942_vm3, %v3917_v44  ;;  %v5108_v46 = vadd.f32 %v5064_v57, %v4814_v58  ;;  %v3752_v61 = vpop.f32.mrb[9].mxu0 }
 0x1f7   : > { %3949 = vst.msk [vmem:[%s6451_s27 + $0x30] sm:$0xff] %vm3942_vm3, %v3916_v2  ;;  %v5109_v7 = vadd.f32 %v3752_v61, %v1801_v59 }
 0x1f8   : > { %v3919_v21 = vadd.f32 %v5108_v46, %v6444_v12 }
 0x1f9   : > { %v3918_v23 = vadd.f32 %v5109_v7, %v6444_v12  ;;  %v5067_v29 = vpop.f32.mrb[10].mxu0 }
 0x1fa   : > { %3952 = vst.msk [vmem:[%s6451_s27 + $0x48] sm:$0xff] %vm3942_vm3, %v3919_v21  ;;  %v5110_v6 = vadd.f32 %v5067_v29, %v4817_v60  ;;  %v3762_v31 = vpop.f32.mrb[11].mxu0 }
 0x1fb   : > { %3951 = vst.msk [vmem:[%s6451_s27 + $0x40] sm:$0xff] %vm3942_vm3, %v3918_v23  ;;  %v5111_v32 = vadd.f32 %v3762_v31, %v1811_v62 }
 0x1fc   : > { %v3921_v34 = vadd.f32 %v5110_v6, %v6444_v12 }
 0x1fd   : > { %v3920_v14 = vadd.f32 %v5111_v32, %v6444_v12  ;;  %v5070_v4 = vpop.f32.mrb[12].mxu0 }
 0x1fe   : > { %3954 = vst.msk [vmem:[%s6451_s27 + $0x58] sm:$0xff] %vm3942_vm3, %v3921_v34  ;;  %v5112_v49 = vadd.f32 %v5070_v4, %v4820_v63  ;;  %v3772_v40 = vpop.f32.mrb[13].mxu0 }
 0x1ff   : > { %3953 = vst.msk [vmem:[%s6451_s27 + $0x50] sm:$0xff] %vm3942_vm3, %v3920_v14  ;;  %v5113_v35 = vadd.f32 %v3772_v40, %v1821_v0 }
 0x200   : > { %v3923_v36 = vadd.f32 %v5112_v49, %v6444_v12 }
 0x201   : > { %v3922_v38 = vadd.f32 %v5113_v35, %v6444_v12  ;;  %v4876_v41 = vpop.f32.mrb[16].mxu1  ;;  %v5073_v42 = vpop.f32.mrb[14].mxu0 }
 0x202   : > { %3956 = vst.msk [vmem:[%s6451_s27 + $0x68] sm:$0xff] %vm3942_vm3, %v3923_v36  ;;  %v5114_v45 = vadd.f32 %v5073_v42, %v4823_v1  ;;  %v2231_v47 = vpop.f32.mrb[17].mxu1  ;;  %v3782_v30 = vpop.f32.mrb[15].mxu0 }
 0x203   : > { %3955 = vst.msk [vmem:[%s6451_s27 + $0x60] sm:$0xff] %vm3942_vm3, %v3922_v38  ;;  %v5115_v48 = vadd.f32 %v3782_v30, %v6439_v8 }
 0x204   : > { %v3925_v50 = vadd.f32 %v5114_v45, %v6444_v12 }
 0x205   : > { %v3924_v51 = vadd.f32 %v5115_v48, %v6444_v12  ;;  %v4879_v52 = vpop.f32.mrb[18].mxu1  ;;  %v5076_v53 = vpop.f32.mrb[16].mxu0 }
 0x206   : > { %3958 = vst.msk [vmem:[%s6451_s27 + $0x78] sm:$0xff] %vm3942_vm3, %v3925_v50  ;;  %v5116_v54 = vadd.f32 %v5076_v53, %v4876_v41  ;;  %v2241_v55 = vpop.f32.mrb[19].mxu1  ;;  %v3792_v56 = vpop.f32.mrb[17].mxu0 }
 0x207   : > { %3957 = vst.msk [vmem:[%s6451_s27 + $0x70] sm:$0xff] %vm3942_vm3, %v3924_v51  ;;  %v5117_v58 = vadd.f32 %v3792_v56, %v2231_v47 }
 0x208   : > { %v3927_v59 = vadd.f32 %v5116_v54, %v6444_v12 }
 0x209   : > { %v3926_v60 = vadd.f32 %v5117_v58, %v6444_v12  ;;  %v4882_v62 = vpop.f32.mrb[20].mxu1  ;;  %v5079_v63 = vpop.f32.mrb[18].mxu0 }
 0x20a   : > { %3960 = vst.msk [vmem:[%s6451_s27 + $0x88] sm:$0xff] %vm3942_vm3, %v3927_v59  ;;  %v5118_v0 = vadd.f32 %v5079_v63, %v4879_v52  ;;  %v2251_v1 = vpop.f32.mrb[21].mxu1  ;;  %v3802_v8 = vpop.f32.mrb[19].mxu0 }
 0x20b   : > { %3959 = vst.msk [vmem:[%s6451_s27 + $0x80] sm:$0xff] %vm3942_vm3, %v3926_v60  ;;  %v5119_v11 = vadd.f32 %v3802_v8, %v2241_v55 }
 0x20c   : > { %v3929_v13 = vadd.f32 %v5118_v0, %v6444_v12 }
 0x20d   : > { %v3928_v15 = vadd.f32 %v5119_v11, %v6444_v12  ;;  %v4885_v16 = vpop.f32.mrb[22].mxu1  ;;  %v5082_v17 = vpop.f32.mrb[20].mxu0 }
 0x20e   : > { %3962 = vst.msk [vmem:[%s6451_s27 + $0x98] sm:$0xff] %vm3942_vm3, %v3929_v13  ;;  %v5120_v18 = vadd.f32 %v5082_v17, %v4882_v62  ;;  %v2261_v10 = vpop.f32.mrb[23].mxu1  ;;  %v3812_v19 = vpop.f32.mrb[21].mxu0 }
 0x20f   : > { %3961 = vst.msk [vmem:[%s6451_s27 + $0x90] sm:$0xff] %vm3942_vm3, %v3928_v15  ;;  %v5121_v20 = vadd.f32 %v3812_v19, %v2251_v1 }
 0x210   : > { %v3931_v22 = vadd.f32 %v5120_v18, %v6444_v12 }
 0x211   : > { %v3930_v5 = vadd.f32 %v5121_v20, %v6444_v12  ;;  %v4888_v25 = vpop.f32.mrb[24].mxu1  ;;  %v5085_v26 = vpop.f32.mrb[22].mxu0 }
 0x212   : > { %3964 = vst.msk [vmem:[%s6451_s27 + $0xa8] sm:$0xff] %vm3942_vm3, %v3931_v22  ;;  %v5122_v27 = vadd.f32 %v5085_v26, %v4885_v16  ;;  %v2271_v28 = vpop.f32.mrb[25].mxu1  ;;  %v3822_v3 = vpop.f32.mrb[23].mxu0 }
 0x213   : > { %3963 = vst.msk [vmem:[%s6451_s27 + $0xa0] sm:$0xff] %vm3942_vm3, %v3930_v5  ;;  %v5123_v9 = vadd.f32 %v3822_v3, %v2261_v10 }
 0x214   : > { %v3933_v43 = vadd.f32 %v5122_v27, %v6444_v12 }
 0x215   : > { %v3932_v37 = vadd.f32 %v5123_v9, %v6444_v12  ;;  %v4891_v39 = vpop.f32.mrb[26].mxu1  ;;  %v5088_v24 = vpop.f32.mrb[24].mxu0 }
 0x216   : > { %3966 = vst.msk [vmem:[%s6451_s27 + $0xb8] sm:$0xff] %vm3942_vm3, %v3933_v43  ;;  %v5124_v33 = vadd.f32 %v5088_v24, %v4888_v25  ;;  %v2281_v44 = vpop.f32.mrb[27].mxu1  ;;  %v3832_v2 = vpop.f32.mrb[25].mxu0 }
 0x217   : > { %3965 = vst.msk [vmem:[%s6451_s27 + $0xb0] sm:$0xff] %vm3942_vm3, %v3932_v37  ;;  %v5125_v57 = vadd.f32 %v3832_v2, %v2271_v28 }
 0x218   : > { %v3935_v46 = vadd.f32 %v5124_v33, %v6444_v12 }
 0x219   : > { %v3934_v61 = vadd.f32 %v5125_v57, %v6444_v12  ;;  %v4894_v7 = vpop.f32.mrb[28].mxu1  ;;  %v5091_v21 = vpop.f32.mrb[26].mxu0 }
 0x21a   : > { %3968 = vst.msk [vmem:[%s6451_s27 + $0xc8] sm:$0xff] %vm3942_vm3, %v3935_v46  ;;  %v5126_v23 = vadd.f32 %v5091_v21, %v4891_v39  ;;  %v2291_v29 = vpop.f32.mrb[29].mxu1  ;;  %v3842_v6 = vpop.f32.mrb[27].mxu0 }
 0x21b   : > { %3967 = vst.msk [vmem:[%s6451_s27 + $0xc0] sm:$0xff] %vm3942_vm3, %v3934_v61  ;;  %v5127_v31 = vadd.f32 %v3842_v6, %v2281_v44 }
 0x21c   : > { %v3937_v32 = vadd.f32 %v5126_v23, %v6444_v12 }
 0x21d   : > { %v3936_v34 = vadd.f32 %v5127_v31, %v6444_v12  ;;  %v4897_v14 = vpop.f32.mrb[30].mxu1  ;;  %v5094_v4 = vpop.f32.mrb[28].mxu0 }
 0x21e   : > { %3970 = vst.msk [vmem:[%s6451_s27 + $0xd8] sm:$0xff] %vm3942_vm3, %v3937_v32  ;;  %v5128_v49 = vadd.f32 %v5094_v4, %v4894_v7  ;;  %v2301_v40 = vpop.f32.mrb[31].mxu1  ;;  %v3852_v35 = vpop.f32.mrb[29].mxu0 }
 0x21f   : > { %3969 = vst.msk [vmem:[%s6451_s27 + $0xd0] sm:$0xff] %vm3942_vm3, %v3936_v34  ;;  %v5129_v36 = vadd.f32 %v3852_v35, %v2291_v29 }
 0x220   : > { %v3939_v38 = vadd.f32 %v5128_v49, %v6444_v12 }
 0x221   : > { %v3938_v41 = vadd.f32 %v5129_v36, %v6444_v12  ;;  %v5097_v42 = vpop.f32.mrb[30].mxu0 }
 0x222   : > { %3972 = vst.msk [vmem:[%s6451_s27 + $0xe8] sm:$0xff] %vm3942_vm3, %v3939_v38  ;;  %v5130_v45 = vadd.f32 %v5097_v42, %v4897_v14  ;;  %v3862_v47 = vpop.f32.mrb[31].mxu0 }
 0x223   : > { %3971 = vst.msk [vmem:[%s6451_s27 + $0xe0] sm:$0xff] %vm3942_vm3, %v3938_v41  ;;  %v5131_v30 = vadd.f32 %v3862_v47, %v2301_v40 }
 0x224   : > { %v3941_v48 = vadd.f32 %v5130_v45, %v6444_v12 }
 0x225   : > { %v3940_v50 = vadd.f32 %v5131_v30, %v6444_v12 }
 0x226   : > { %3974 = vst.msk [vmem:[%s6451_s27 + $0xf8] sm:$0xff] %vm3942_vm3, %v3941_v48 }
 0x227   : > { %3973 = vst.msk [vmem:[%s6451_s27 + $0xf0] sm:$0xff] %vm3942_vm3, %v3940_v50 }
 0x228 PF: > { %s15_s18 = sadd.s32 1, %s5371_s18  }
 0x229   : > { %p12_p4 = scmp.ge.s32.totalorder %s15_s18, 4  }
 0x22b   :  { %14 = sbr.rel (!%p12_p4) target bundleno = 1 (0x1), region = 80 }

</bundles_post_ra>
